<compile_context>
chip_gen: v5e
topology: v5e:2x2
jax: 0.10.0
libtpu: 0.0.40
codegen_flags: <defaults>
</compile_context>

<pallas_src>
import functools

import jax
import jax.numpy as jnp
from jax import lax
from jax.experimental import pallas as pl
from jax.experimental.pallas import tpu as pltpu  # noqa: F401  (TPU backend / interpret helpers)

# ---------------- configuration (small, consistent with the module) ----------------
B = 2            # batch
INPUT_LEN = 8    # source sequence length
TARGET_LEN = 4   # target sequence length
D_MODEL = 32     # feature / model dim (n_features == d_model)
N_HEADS = 2
D_HEAD = D_MODEL // N_HEADS
FF_UNITS = 64
DTYPE = jnp.float32
LANE = 128       # all weight slabs / activations are padded to one full lane group

# slab indices (plain Python ints, safe to close over)
W_ES_QKV, W_ES_O, W_EF_1, W_DS_QKV, W_DS_O, W_DC_Q, W_DC_KV, W_DC_O, W_DF_1 = range(9)
W64_EF_2, W64_DF_2 = range(2)
(B_ES_QKV, B_ES_O, B_EF_1, B_DS_QKV, B_DS_O,
 B_DC_Q, B_DC_KV, B_DC_O, B_DF_1, B_EF_2, B_DF_2) = range(11)


# ---------------- fused forward kernel (single invocation, no grid) ----------------
def _fused_kernel(src_ref, tgt_ref, w32_ref, w64_ref, b_ref, o_ref, *,
                  batch, input_len, target_len):
    D, H, DH, F = D_MODEL, N_HEADS, D_HEAD, FF_UNITS
    scale = 1.0 / float(DH) ** 0.5

    def bias(i):                       # (1, 128) row, broadcast-added to (L, 128)
        return b_ref[i:i + 1, :]

    def mha(q_all, kv_all, q_off, k_off, v_off, lq, lk, wo, bo, causal_bias):
        """q_all:(batch*lq,128), kv_all:(batch*lk,128); per-batch, per-head attention."""
        blocks = []
        for b in range(batch):                                  # static unroll (batch=2)
            qb = q_all[b * lq:(b + 1) * lq, :]
            kvb = kv_all[b * lk:(b + 1) * lk, :]
            acc = None
            for h in range(H):                                  # static unroll (heads=2)
                Qh = qb[:, q_off + h * DH: q_off + (h + 1) * DH]     # (lq, DH)
                Kh = kvb[:, k_off + h * DH: k_off + (h + 1) * DH]    # (lk, DH)
                Vh = kvb[:, v_off + h * DH: v_off + (h + 1) * DH]    # (lk, DH)
                # contract on last dims -> no explicit Kh.T transpose
                s = lax.dot_general(Qh, Kh, (((1,), (1,)), ((), ())),
                                    preferred_element_type=jnp.float32) * scale
                if causal_bias is not None:
                    s = s + causal_bias
                m = jnp.max(s, axis=-1, keepdims=True)
                p = jnp.exp(s - m)
                inv = pl.reciprocal(jnp.sum(p, axis=-1, keepdims=True), approx=True)
                a = p * inv
                ctx = jnp.dot(a, Vh, preferred_element_type=jnp.float32)        # (lq, DH)
                # fold W_o per head -> no lane-concat of head contexts
                part = jnp.dot(ctx, wo[h * DH:(h + 1) * DH, :],
                               preferred_element_type=jnp.float32)              # (lq, 128)
                acc = part if acc is None else acc + part
            blocks.append(acc)
        out = blocks[0] if batch == 1 else jnp.concatenate(blocks, axis=0)
        return out + bo                                                         # (batch*lq, 128)

    # ---------------- encoder: self-attention (no source mask) + feed-forward ----------------
    src = src_ref[...]                                                          # (B*S, D)
    qkv_e = jnp.dot(src, w32_ref[W_ES_QKV],
                    preferred_element_type=jnp.float32) + bias(B_ES_QKV)        # Q|K|V|0-pad
    enc_att = mha(qkv_e, qkv_e, 0, D, 2 * D, input_len, input_len,
                  w32_ref[W_ES_O], bias(B_ES_O), None)
    h1 = jnp.maximum(jnp.dot(enc_att[:, :D], w32_ref[W_EF_1],
                             preferred_element_type=jnp.float32) + bias(B_EF_1), 0.0)
    enc_states = jnp.dot(h1[:, :F], w64_ref[W64_EF_2],
                         preferred_element_type=jnp.float32) + bias(B_EF_2)     # (B*S, 128)

    # ---------------- decoder ----------------
    # causal (subsequent) mask as an additive bias, built purely in-trace (no captured consts)
    row = lax.broadcasted_iota(jnp.int32, (target_len, target_len), 0)
    col = lax.broadcasted_iota(jnp.int32, (target_len, target_len), 1)
    causal_bias = jnp.where(col <= row, 0.0, -1e9)

    tgt = tgt_ref[...]                                                          # (B*T, D)
    qkv_d = jnp.dot(tgt, w32_ref[W_DS_QKV],
                    preferred_element_type=jnp.float32) + bias(B_DS_QKV)
    att1 = mha(qkv_d, qkv_d, 0, D, 2 * D, target_len, target_len,
               w32_ref[W_DS_O], bias(B_DS_O), causal_bias)

    # cross-attention: queries from the decoder, keys/values from the encoder states
    q_c = jnp.dot(att1[:, :D], w32_ref[W_DC_Q],
                  preferred_element_type=jnp.float32) + bias(B_DC_Q)            # Q at [0:D]
    kv_c = jnp.dot(enc_states[:, :D], w32_ref[W_DC_KV],
                   preferred_element_type=jnp.float32) + bias(B_DC_KV)          # K[0:D], V[D:2D]
    att2 = mha(q_c, kv_c, 0, 0, D, target_len, input_len,
               w32_ref[W_DC_O], bias(B_DC_O), None)

    h2 = jnp.maximum(jnp.dot(att2[:, :D], w32_ref[W_DF_1],
                             preferred_element_type=jnp.float32) + bias(B_DF_1), 0.0)
    out = jnp.dot(h2[:, :F], w64_ref[W64_DF_2],
                  preferred_element_type=jnp.float32) + bias(B_DF_2)            # (B*T, 128)

    # full 128-lane (unmasked) store; wrapper slices lanes [:D] back out
    o_ref[...] = out.astype(o_ref.dtype)


# ---------------- parameter packing (3 slabs -> 3 operand DMAs) ----------------
def _pad_lanes(w):
    r, c = w.shape
    return jnp.pad(w, ((0, 0), (0, LANE - c)))


def _pack_params(params):
    es, ef = params["enc_self"], params["enc_ffn"]
    ds, dc, df = params["dec_self"], params["dec_cross"], params["dec_ffn"]

    es_wqkv = jnp.concatenate([es["wq"], es["wk"], es["wv"]], axis=1)   # (D, 3D)
    ds_wqkv = jnp.concatenate([ds["wq"], ds["wk"], ds["wv"]], axis=1)
    dc_wkv = jnp.concatenate([dc["wk"], dc["wv"]], axis=1)              # (D, 2D)

    w32 = jnp.stack([_pad_lanes(w) for w in
                     (es_wqkv, es["wo"], ef["w1"], ds_wqkv, ds["wo"],
                      dc["wq"], dc_wkv, dc["wo"], df["w1"])])           # (9, 32, 128)
    w64 = jnp.stack([_pad_lanes(w) for w in (ef["w2"], df["w2"])])      # (2, 64, 128)

    es_bqkv = jnp.concatenate([es["bq"], es["bk"], es["bv"]], axis=1)
    ds_bqkv = jnp.concatenate([ds["bq"], ds["bk"], ds["bv"]], axis=1)
    dc_bkv = jnp.concatenate([dc["bk"], dc["bv"]], axis=1)
    bias = jnp.concatenate([_pad_lanes(b) for b in
                            (es_bqkv, es["bo"], ef["b1"], ds_bqkv, ds["bo"],
                             dc["bq"], dc_bkv, dc["bo"], df["b1"],
                             ef["b2"], df["b2"])], axis=0)              # (11, 128)
    return w32, w64, bias


# ---------------- wrapper: training branch of EncoderDecoderSelfAttn.forward ----------------
def encoder_decoder_self_attn_forward(X, params, input_len=INPUT_LEN, target_len=TARGET_LEN,
                                      source_mask=None):
    if source_mask is not None:
        # TODO(synk): user-supplied source_mask not supported in the fused kernel.
        raise NotImplementedError("source_mask is not supported by the fused kernel")

    Bx, L, D = X.shape
    assert D == D_MODEL and L == input_len + target_len

    # batch stacked along sublanes -> one grid step, larger matmul occupancy
    src = X[:, :input_len, :].reshape(Bx * input_len, D)           # (B*S, D)
    tgt = X[:, input_len - 1:-1, :].reshape(Bx * target_len, D)    # (B*T, D)

    w32, w64, bias = _pack_params(params)   # NOTE: in a real model, pack once outside the step

    kernel = functools.partial(_fused_kernel, batch=Bx,
                               input_len=input_len, target_len=target_len)

    out_pad = pl.pallas_call(
        kernel,
        # lane-dense (128-wide) output -> unmasked full-width stores in the kernel
        out_shape=jax.ShapeDtypeStruct((Bx * target_len, LANE), X.dtype),
        # no grid: single kernel invocation, every (tiny) operand mapped whole into VMEM;
        # weight slabs are DMA'd once with no pipeline double-buffering.
    )(src, tgt, w32, w64, bias)

    return out_pad[:, :D].reshape(Bx, target_len, D)


# ---------------- parameter construction (deterministic) ----------------
def _linear(key, fan_in, fan_out):
    kw, kb = jax.random.split(key)
    w = jax.random.normal(kw, (fan_in, fan_out), DTYPE) * 0.1
    b = jax.random.normal(kb, (1, fan_out), DTYPE) * 0.01
    return w, b


def make_mha_params(key, d_model):
    ks = jax.random.split(key, 4)
    wq, bq = _linear(ks[0], d_model, d_model)
    wk, bk = _linear(ks[1], d_model, d_model)
    wv, bv = _linear(ks[2], d_model, d_model)
    wo, bo = _linear(ks[3], d_model, d_model)
    return dict(wq=wq, bq=bq, wk=wk, bk=bk, wv=wv, bv=bv, wo=wo, bo=bo)


def make_ffn_params(key, d_model, ff_units):
    k1, k2 = jax.random.split(key)
    w1, b1 = _linear(k1, d_model, ff_units)
    w2, b2 = _linear(k2, ff_units, d_model)
    return dict(w1=w1, b1=b1, w2=w2, b2=b2)


def make_params(key):
    k = jax.random.split(key, 5)
    return {
        "enc_self": make_mha_params(k[0], D_MODEL),
        "enc_ffn": make_ffn_params(k[1], D_MODEL, FF_UNITS),
        "dec_self": make_mha_params(k[2], D_MODEL),
        "dec_cross": make_mha_params(k[3], D_MODEL),
        "dec_ffn": make_ffn_params(k[4], D_MODEL, FF_UNITS),
    }


# ---------------- pure-JAX reference for verification ----------------
def subsequent_mask_jnp(size):
    return jnp.tril(jnp.ones((size, size), DTYPE))   # lower-triangular incl. diagonal


def _ref_mha(q, kv, mask, p, n_heads=N_HEADS):
    Q = q @ p["wq"] + p["bq"]
    K = kv @ p["wk"] + p["bk"]
    V = kv @ p["wv"] + p["bv"]
    Bq, Lq, D = Q.shape
    Lk = K.shape[1]
    d_k = D // n_heads
    Qh = Q.reshape(Bq, Lq, n_heads, d_k).transpose(0, 2, 1, 3)
    Kh = K.reshape(Bq, Lk, n_heads, d_k).transpose(0, 2, 1, 3)
    Vh = V.reshape(Bq, Lk, n_heads, d_k).transpose(0, 2, 1, 3)
    scores = jnp.einsum("bhqd,bhkd->bhqk", Qh, Kh) / jnp.sqrt(jnp.float32(d_k))
    scores = jnp.where(mask[None, None] == 0, -1e9, scores)
    alphas = jax.nn.softmax(scores, axis=-1)
    ctx = jnp.einsum("bhqk,bhkd->bhqd", alphas, Vh)
    ctx = ctx.transpose(0, 2, 1, 3).reshape(Bq, Lq, D)
    return ctx @ p["wo"] + p["bo"]


def _ref_ffn(x, p):
    return jnp.maximum(x @ p["w1"] + p["b1"], 0.0) @ p["w2"] + p["b2"]


def _ref_forward(X, params, input_len, target_len):
    src = X[:, :input_len, :]
    tgt = X[:, input_len - 1:-1, :]
    trg_mask = subsequent_mask_jnp(target_len)
    enc = _ref_ffn(
        _ref_mha(src, src, jnp.ones((input_len, input_len), DTYPE), params["enc_self"]),
        params["enc_ffn"])
    a1 = _ref_mha(tgt, tgt, trg_mask, params["dec_self"])
    a2 = _ref_mha(a1, enc, jnp.ones((target_len, input_len), DTYPE), params["dec_cross"])
    return _ref_ffn(a2, params["dec_ffn"])


# ---------------- main ----------------
if __name__ == "__main__":
    key = jax.random.PRNGKey(0)
    kx, kp = jax.random.split(key)
    X = jax.random.normal(kx, (B, INPUT_LEN + TARGET_LEN, D_MODEL), DTYPE)
    params = make_params(kp)

    out = encoder_decoder_self_attn_forward(X, params, INPUT_LEN, TARGET_LEN)
    out = jax.block_until_ready(out)

    ref = _ref_forward(X, params, INPUT_LEN, TARGET_LEN)
    assert out.shape == (B, TARGET_LEN, D_MODEL), out.shape
    max_err = float(jnp.max(jnp.abs(out - ref)))
    # tolerance loosened slightly vs. pure-f32: pl.reciprocal(approx=True) in the softmax
    assert jnp.allclose(out, ref, atol=1e-3, rtol=1e-3), max_err

    print("KERNEL_OK")
</pallas_src>

<mosaic_0001>
module attributes {stable_mosaic.version = 11 : i64} {
  func.func @_fused_kernel(%arg0: memref<16x32xf32, #tpu.memory_space<vmem>>, %arg1: memref<8x32xf32, #tpu.memory_space<vmem>>, %arg2: memref<9x32x128xf32, #tpu.memory_space<vmem>>, %arg3: memref<2x64x128xf32, #tpu.memory_space<vmem>>, %arg4: memref<11x128xf32, #tpu.memory_space<vmem>>, %arg5: memref<8x128xf32, #tpu.memory_space<vmem>>) attributes {dimension_semantics = [], scalar_prefetch = 0 : i64, scratch_operands = 0 : i64, tpu.core_type = #tpu.core_type<tc>} {
    %c0 = arith.constant 0 : index
    %c0_0 = arith.constant 0 : index
    %0 = vector.load %arg0[%c0, %c0_0] : memref<16x32xf32, #tpu.memory_space<vmem>>, vector<16x32xf32>
    %c0_1 = arith.constant 0 : index
    %c0_2 = arith.constant 0 : index
    %c0_3 = arith.constant 0 : index
    %1 = vector.load %arg2[%c0_1, %c0_2, %c0_3] : memref<9x32x128xf32, #tpu.memory_space<vmem>>, vector<1x32x128xf32>
    %2 = vector.shape_cast %1 : vector<1x32x128xf32> to vector<32x128xf32>
    %cst = arith.constant dense<0.000000e+00> : vector<16x128xf32>
    %3 = tpu.matmul %0, %2, %cst {dimension_numbers = #tpu.dot_dimension_numbers<[1], [0], [0], [1], [0, 0, 1, 1], [], []>} : vector<16x32xf32>, vector<32x128xf32>, vector<16x128xf32> -> vector<16x128xf32>
    %c0_4 = arith.constant 0 : index
    %c0_5 = arith.constant 0 : index
    %4 = vector.load %arg4[%c0_4, %c0_5] : memref<11x128xf32, #tpu.memory_space<vmem>>, vector<1x128xf32>
    %5 = vector.broadcast %4 : vector<1x128xf32> to vector<16x128xf32>
    %6 = arith.addf %3, %5 : vector<16x128xf32>
    %c1 = arith.constant 1 : index
    %c0_6 = arith.constant 0 : index
    %c0_7 = arith.constant 0 : index
    %7 = vector.load %arg2[%c1, %c0_6, %c0_7] : memref<9x32x128xf32, #tpu.memory_space<vmem>>, vector<1x32x128xf32>
    %8 = vector.shape_cast %7 : vector<1x32x128xf32> to vector<32x128xf32>
    %c1_8 = arith.constant 1 : index
    %c0_9 = arith.constant 0 : index
    %9 = vector.load %arg4[%c1_8, %c0_9] : memref<11x128xf32, #tpu.memory_space<vmem>>, vector<1x128xf32>
    %10 = vector.extract_strided_slice %6 {offsets = [0, 0], sizes = [8, 128], strides = [1, 1]} : vector<16x128xf32> to vector<8x128xf32>
    %11 = vector.extract_strided_slice %6 {offsets = [0, 0], sizes = [8, 128], strides = [1, 1]} : vector<16x128xf32> to vector<8x128xf32>
    %12 = vector.extract_strided_slice %10 {offsets = [0, 0], sizes = [8, 16], strides = [1, 1]} : vector<8x128xf32> to vector<8x16xf32>
    %13 = vector.extract_strided_slice %11 {offsets = [0, 32], sizes = [8, 16], strides = [1, 1]} : vector<8x128xf32> to vector<8x16xf32>
    %14 = vector.extract_strided_slice %11 {offsets = [0, 64], sizes = [8, 16], strides = [1, 1]} : vector<8x128xf32> to vector<8x16xf32>
    %cst_10 = arith.constant dense<0.000000e+00> : vector<8x8xf32>
    %15 = tpu.matmul %12, %13, %cst_10 {dimension_numbers = #tpu.dot_dimension_numbers<[1], [1], [0], [0], [0, 0, 1, 0], [], []>} : vector<8x16xf32>, vector<8x16xf32>, vector<8x8xf32> -> vector<8x8xf32>
    %cst_11 = arith.constant 2.500000e-01 : f32
    %16 = vector.broadcast %cst_11 : f32 to vector<8x8xf32>
    %17 = arith.mulf %15, %16 : vector<8x8xf32>
    %cst_12 = arith.constant dense<0xFF800000> : vector<8xf32>
    %18 = vector.multi_reduction <maximumf>, %17, %cst_12 [1] : vector<8x8xf32> to vector<8xf32>
    %19 = vector.shape_cast %18 : vector<8xf32> to vector<8x1xf32>
    %20 = vector.broadcast %19 : vector<8x1xf32> to vector<8x8xf32>
    %21 = arith.subf %17, %20 : vector<8x8xf32>
    %22 = math.exp %21 : vector<8x8xf32>
    %cst_13 = arith.constant dense<0.000000e+00> : vector<8xf32>
    %23 = vector.multi_reduction <add>, %22, %cst_13 [1] : vector<8x8xf32> to vector<8xf32>
    %24 = vector.shape_cast %23 : vector<8xf32> to vector<8x1xf32>
    %25 = tpu.reciprocal %24 {approx = true} : vector<8x1xf32> -> vector<8x1xf32>
    %26 = vector.broadcast %25 : vector<8x1xf32> to vector<8x8xf32>
    %27 = arith.mulf %22, %26 : vector<8x8xf32>
    %cst_14 = arith.constant dense<0.000000e+00> : vector<8x16xf32>
    %28 = tpu.matmul %27, %14, %cst_14 {dimension_numbers = #tpu.dot_dimension_numbers<[1], [0], [0], [1], [0, 0, 1, 1], [], []>} : vector<8x8xf32>, vector<8x16xf32>, vector<8x16xf32> -> vector<8x16xf32>
    %29 = vector.extract_strided_slice %8 {offsets = [0, 0], sizes = [16, 128], strides = [1, 1]} : vector<32x128xf32> to vector<16x128xf32>
    %cst_15 = arith.constant dense<0.000000e+00> : vector<8x128xf32>
    %30 = tpu.matmul %28, %29, %cst_15 {dimension_numbers = #tpu.dot_dimension_numbers<[1], [0], [0], [1], [0, 0, 1, 1], [], []>} : vector<8x16xf32>, vector<16x128xf32>, vector<8x128xf32> -> vector<8x128xf32>
    %31 = vector.extract_strided_slice %10 {offsets = [0, 16], sizes = [8, 16], strides = [1, 1]} : vector<8x128xf32> to vector<8x16xf32>
    %32 = vector.extract_strided_slice %11 {offsets = [0, 48], sizes = [8, 16], strides = [1, 1]} : vector<8x128xf32> to vector<8x16xf32>
    %33 = vector.extract_strided_slice %11 {offsets = [0, 80], sizes = [8, 16], strides = [1, 1]} : vector<8x128xf32> to vector<8x16xf32>
    %cst_16 = arith.constant dense<0.000000e+00> : vector<8x8xf32>
    %34 = tpu.matmul %31, %32, %cst_16 {dimension_numbers = #tpu.dot_dimension_numbers<[1], [1], [0], [0], [0, 0, 1, 0], [], []>} : vector<8x16xf32>, vector<8x16xf32>, vector<8x8xf32> -> vector<8x8xf32>
    %cst_17 = arith.constant 2.500000e-01 : f32
    %35 = vector.broadcast %cst_17 : f32 to vector<8x8xf32>
    %36 = arith.mulf %34, %35 : vector<8x8xf32>
    %cst_18 = arith.constant dense<0xFF800000> : vector<8xf32>
    %37 = vector.multi_reduction <maximumf>, %36, %cst_18 [1] : vector<8x8xf32> to vector<8xf32>
    %38 = vector.shape_cast %37 : vector<8xf32> to vector<8x1xf32>
    %39 = vector.broadcast %38 : vector<8x1xf32> to vector<8x8xf32>
    %40 = arith.subf %36, %39 : vector<8x8xf32>
    %41 = math.exp %40 : vector<8x8xf32>
    %cst_19 = arith.constant dense<0.000000e+00> : vector<8xf32>
    %42 = vector.multi_reduction <add>, %41, %cst_19 [1] : vector<8x8xf32> to vector<8xf32>
    %43 = vector.shape_cast %42 : vector<8xf32> to vector<8x1xf32>
    %44 = tpu.reciprocal %43 {approx = true} : vector<8x1xf32> -> vector<8x1xf32>
    %45 = vector.broadcast %44 : vector<8x1xf32> to vector<8x8xf32>
    %46 = arith.mulf %41, %45 : vector<8x8xf32>
    %cst_20 = arith.constant dense<0.000000e+00> : vector<8x16xf32>
    %47 = tpu.matmul %46, %33, %cst_20 {dimension_numbers = #tpu.dot_dimension_numbers<[1], [0], [0], [1], [0, 0, 1, 1], [], []>} : vector<8x8xf32>, vector<8x16xf32>, vector<8x16xf32> -> vector<8x16xf32>
    %48 = vector.extract_strided_slice %8 {offsets = [16, 0], sizes = [16, 128], strides = [1, 1]} : vector<32x128xf32> to vector<16x128xf32>
    %cst_21 = arith.constant dense<0.000000e+00> : vector<8x128xf32>
    %49 = tpu.matmul %47, %48, %cst_21 {dimension_numbers = #tpu.dot_dimension_numbers<[1], [0], [0], [1], [0, 0, 1, 1], [], []>} : vector<8x16xf32>, vector<16x128xf32>, vector<8x128xf32> -> vector<8x128xf32>
    %50 = arith.addf %30, %49 : vector<8x128xf32>
    %51 = vector.extract_strided_slice %6 {offsets = [8, 0], sizes = [8, 128], strides = [1, 1]} : vector<16x128xf32> to vector<8x128xf32>
    %52 = vector.extract_strided_slice %6 {offsets = [8, 0], sizes = [8, 128], strides = [1, 1]} : vector<16x128xf32> to vector<8x128xf32>
    %53 = vector.extract_strided_slice %51 {offsets = [0, 0], sizes = [8, 16], strides = [1, 1]} : vector<8x128xf32> to vector<8x16xf32>
    %54 = vector.extract_strided_slice %52 {offsets = [0, 32], sizes = [8, 16], strides = [1, 1]} : vector<8x128xf32> to vector<8x16xf32>
    %55 = vector.extract_strided_slice %52 {offsets = [0, 64], sizes = [8, 16], strides = [1, 1]} : vector<8x128xf32> to vector<8x16xf32>
    %cst_22 = arith.constant dense<0.000000e+00> : vector<8x8xf32>
    %56 = tpu.matmul %53, %54, %cst_22 {dimension_numbers = #tpu.dot_dimension_numbers<[1], [1], [0], [0], [0, 0, 1, 0], [], []>} : vector<8x16xf32>, vector<8x16xf32>, vector<8x8xf32> -> vector<8x8xf32>
    %cst_23 = arith.constant 2.500000e-01 : f32
    %57 = vector.broadcast %cst_23 : f32 to vector<8x8xf32>
    %58 = arith.mulf %56, %57 : vector<8x8xf32>
    %cst_24 = arith.constant dense<0xFF800000> : vector<8xf32>
    %59 = vector.multi_reduction <maximumf>, %58, %cst_24 [1] : vector<8x8xf32> to vector<8xf32>
    %60 = vector.shape_cast %59 : vector<8xf32> to vector<8x1xf32>
    %61 = vector.broadcast %60 : vector<8x1xf32> to vector<8x8xf32>
    %62 = arith.subf %58, %61 : vector<8x8xf32>
    %63 = math.exp %62 : vector<8x8xf32>
    %cst_25 = arith.constant dense<0.000000e+00> : vector<8xf32>
    %64 = vector.multi_reduction <add>, %63, %cst_25 [1] : vector<8x8xf32> to vector<8xf32>
    %65 = vector.shape_cast %64 : vector<8xf32> to vector<8x1xf32>
    %66 = tpu.reciprocal %65 {approx = true} : vector<8x1xf32> -> vector<8x1xf32>
    %67 = vector.broadcast %66 : vector<8x1xf32> to vector<8x8xf32>
    %68 = arith.mulf %63, %67 : vector<8x8xf32>
    %cst_26 = arith.constant dense<0.000000e+00> : vector<8x16xf32>
    %69 = tpu.matmul %68, %55, %cst_26 {dimension_numbers = #tpu.dot_dimension_numbers<[1], [0], [0], [1], [0, 0, 1, 1], [], []>} : vector<8x8xf32>, vector<8x16xf32>, vector<8x16xf32> -> vector<8x16xf32>
    %70 = vector.extract_strided_slice %8 {offsets = [0, 0], sizes = [16, 128], strides = [1, 1]} : vector<32x128xf32> to vector<16x128xf32>
    %cst_27 = arith.constant dense<0.000000e+00> : vector<8x128xf32>
    %71 = tpu.matmul %69, %70, %cst_27 {dimension_numbers = #tpu.dot_dimension_numbers<[1], [0], [0], [1], [0, 0, 1, 1], [], []>} : vector<8x16xf32>, vector<16x128xf32>, vector<8x128xf32> -> vector<8x128xf32>
    %72 = vector.extract_strided_slice %51 {offsets = [0, 16], sizes = [8, 16], strides = [1, 1]} : vector<8x128xf32> to vector<8x16xf32>
    %73 = vector.extract_strided_slice %52 {offsets = [0, 48], sizes = [8, 16], strides = [1, 1]} : vector<8x128xf32> to vector<8x16xf32>
    %74 = vector.extract_strided_slice %52 {offsets = [0, 80], sizes = [8, 16], strides = [1, 1]} : vector<8x128xf32> to vector<8x16xf32>
    %cst_28 = arith.constant dense<0.000000e+00> : vector<8x8xf32>
    %75 = tpu.matmul %72, %73, %cst_28 {dimension_numbers = #tpu.dot_dimension_numbers<[1], [1], [0], [0], [0, 0, 1, 0], [], []>} : vector<8x16xf32>, vector<8x16xf32>, vector<8x8xf32> -> vector<8x8xf32>
    %cst_29 = arith.constant 2.500000e-01 : f32
    %76 = vector.broadcast %cst_29 : f32 to vector<8x8xf32>
    %77 = arith.mulf %75, %76 : vector<8x8xf32>
    %cst_30 = arith.constant dense<0xFF800000> : vector<8xf32>
    %78 = vector.multi_reduction <maximumf>, %77, %cst_30 [1] : vector<8x8xf32> to vector<8xf32>
    %79 = vector.shape_cast %78 : vector<8xf32> to vector<8x1xf32>
    %80 = vector.broadcast %79 : vector<8x1xf32> to vector<8x8xf32>
    %81 = arith.subf %77, %80 : vector<8x8xf32>
    %82 = math.exp %81 : vector<8x8xf32>
    %cst_31 = arith.constant dense<0.000000e+00> : vector<8xf32>
    %83 = vector.multi_reduction <add>, %82, %cst_31 [1] : vector<8x8xf32> to vector<8xf32>
    %84 = vector.shape_cast %83 : vector<8xf32> to vector<8x1xf32>
    %85 = tpu.reciprocal %84 {approx = true} : vector<8x1xf32> -> vector<8x1xf32>
    %86 = vector.broadcast %85 : vector<8x1xf32> to vector<8x8xf32>
    %87 = arith.mulf %82, %86 : vector<8x8xf32>
    %cst_32 = arith.constant dense<0.000000e+00> : vector<8x16xf32>
    %88 = tpu.matmul %87, %74, %cst_32 {dimension_numbers = #tpu.dot_dimension_numbers<[1], [0], [0], [1], [0, 0, 1, 1], [], []>} : vector<8x8xf32>, vector<8x16xf32>, vector<8x16xf32> -> vector<8x16xf32>
    %89 = vector.extract_strided_slice %8 {offsets = [16, 0], sizes = [16, 128], strides = [1, 1]} : vector<32x128xf32> to vector<16x128xf32>
    %cst_33 = arith.constant dense<0.000000e+00> : vector<8x128xf32>
    %90 = tpu.matmul %88, %89, %cst_33 {dimension_numbers = #tpu.dot_dimension_numbers<[1], [0], [0], [1], [0, 0, 1, 1], [], []>} : vector<8x16xf32>, vector<16x128xf32>, vector<8x128xf32> -> vector<8x128xf32>
    %91 = arith.addf %71, %90 : vector<8x128xf32>
    %92 = tpu.concatenate %50, %91 in 0 : vector<8x128xf32>, vector<8x128xf32> -> vector<16x128xf32>
    %93 = vector.broadcast %9 : vector<1x128xf32> to vector<16x128xf32>
    %94 = arith.addf %92, %93 : vector<16x128xf32>
    %95 = vector.extract_strided_slice %94 {offsets = [0, 0], sizes = [16, 32], strides = [1, 1]} : vector<16x128xf32> to vector<16x32xf32>
    %c2 = arith.constant 2 : index
    %c0_34 = arith.constant 0 : index
    %c0_35 = arith.constant 0 : index
    %96 = vector.load %arg2[%c2, %c0_34, %c0_35] : memref<9x32x128xf32, #tpu.memory_space<vmem>>, vector<1x32x128xf32>
    %97 = vector.shape_cast %96 : vector<1x32x128xf32> to vector<32x128xf32>
    %cst_36 = arith.constant dense<0.000000e+00> : vector<16x128xf32>
    %98 = tpu.matmul %95, %97, %cst_36 {dimension_numbers = #tpu.dot_dimension_numbers<[1], [0], [0], [1], [0, 0, 1, 1], [], []>} : vector<16x32xf32>, vector<32x128xf32>, vector<16x128xf32> -> vector<16x128xf32>
    %c2_37 = arith.constant 2 : index
    %c0_38 = arith.constant 0 : index
    %99 = vector.load %arg4[%c2_37, %c0_38] : memref<11x128xf32, #tpu.memory_space<vmem>>, vector<1x128xf32>
    %100 = vector.broadcast %99 : vector<1x128xf32> to vector<16x128xf32>
    %101 = arith.addf %98, %100 : vector<16x128xf32>
    %cst_39 = arith.constant 0.000000e+00 : f32
    %102 = vector.broadcast %cst_39 : f32 to vector<16x128xf32>
    %103 = arith.maximumf %101, %102 : vector<16x128xf32>
    %104 = vector.extract_strided_slice %103 {offsets = [0, 0], sizes = [16, 64], strides = [1, 1]} : vector<16x128xf32> to vector<16x64xf32>
    %c0_40 = arith.constant 0 : index
    %c0_41 = arith.constant 0 : index
    %c0_42 = arith.constant 0 : index
    %105 = vector.load %arg3[%c0_40, %c0_41, %c0_42] : memref<2x64x128xf32, #tpu.memory_space<vmem>>, vector<1x64x128xf32>
    %106 = vector.shape_cast %105 : vector<1x64x128xf32> to vector<64x128xf32>
    %cst_43 = arith.constant dense<0.000000e+00> : vector<16x128xf32>
    %107 = tpu.matmul %104, %106, %cst_43 {dimension_numbers = #tpu.dot_dimension_numbers<[1], [0], [0], [1], [0, 0, 1, 1], [], []>} : vector<16x64xf32>, vector<64x128xf32>, vector<16x128xf32> -> vector<16x128xf32>
    %c9 = arith.constant 9 : index
    %c0_44 = arith.constant 0 : index
    %108 = vector.load %arg4[%c9, %c0_44] : memref<11x128xf32, #tpu.memory_space<vmem>>, vector<1x128xf32>
    %109 = vector.broadcast %108 : vector<1x128xf32> to vector<16x128xf32>
    %110 = arith.addf %107, %109 : vector<16x128xf32>
    %111 = tpu.iota {dimensions = array<i32: 0>} : vector<4x4xi32>
    %112 = tpu.iota {dimensions = array<i32: 1>} : vector<4x4xi32>
    %113 = arith.cmpi sle, %112, %111 : vector<4x4xi32>
    %cst_45 = arith.constant 0.000000e+00 : f32
    %cst_46 = arith.constant -1.000000e+09 : f32
    %114 = vector.broadcast %cst_45 : f32 to vector<4x4xf32>
    %115 = vector.broadcast %cst_46 : f32 to vector<4x4xf32>
    %116 = arith.select %113, %114, %115 : vector<4x4xi1>, vector<4x4xf32>
    %c0_47 = arith.constant 0 : index
    %c0_48 = arith.constant 0 : index
    %117 = vector.load %arg1[%c0_47, %c0_48] : memref<8x32xf32, #tpu.memory_space<vmem>>, vector<8x32xf32>
    %c3 = arith.constant 3 : index
    %c0_49 = arith.constant 0 : index
    %c0_50 = arith.constant 0 : index
    %118 = vector.load %arg2[%c3, %c0_49, %c0_50] : memref<9x32x128xf32, #tpu.memory_space<vmem>>, vector<1x32x128xf32>
    %119 = vector.shape_cast %118 : vector<1x32x128xf32> to vector<32x128xf32>
    %cst_51 = arith.constant dense<0.000000e+00> : vector<8x128xf32>
    %120 = tpu.matmul %117, %119, %cst_51 {dimension_numbers = #tpu.dot_dimension_numbers<[1], [0], [0], [1], [0, 0, 1, 1], [], []>} : vector<8x32xf32>, vector<32x128xf32>, vector<8x128xf32> -> vector<8x128xf32>
    %c3_52 = arith.constant 3 : index
    %c0_53 = arith.constant 0 : index
    %121 = vector.load %arg4[%c3_52, %c0_53] : memref<11x128xf32, #tpu.memory_space<vmem>>, vector<1x128xf32>
    %122 = vector.broadcast %121 : vector<1x128xf32> to vector<8x128xf32>
    %123 = arith.addf %120, %122 : vector<8x128xf32>
    %c4 = arith.constant 4 : index
    %c0_54 = arith.constant 0 : index
    %c0_55 = arith.constant 0 : index
    %124 = vector.load %arg2[%c4, %c0_54, %c0_55] : memref<9x32x128xf32, #tpu.memory_space<vmem>>, vector<1x32x128xf32>
    %125 = vector.shape_cast %124 : vector<1x32x128xf32> to vector<32x128xf32>
    %c4_56 = arith.constant 4 : index
    %c0_57 = arith.constant 0 : index
    %126 = vector.load %arg4[%c4_56, %c0_57] : memref<11x128xf32, #tpu.memory_space<vmem>>, vector<1x128xf32>
    %127 = vector.extract_strided_slice %123 {offsets = [0, 0], sizes = [4, 128], strides = [1, 1]} : vector<8x128xf32> to vector<4x128xf32>
    %128 = vector.extract_strided_slice %123 {offsets = [0, 0], sizes = [4, 128], strides = [1, 1]} : vector<8x128xf32> to vector<4x128xf32>
    %129 = vector.extract_strided_slice %127 {offsets = [0, 0], sizes = [4, 16], strides = [1, 1]} : vector<4x128xf32> to vector<4x16xf32>
    %130 = vector.extract_strided_slice %128 {offsets = [0, 32], sizes = [4, 16], strides = [1, 1]} : vector<4x128xf32> to vector<4x16xf32>
    %131 = vector.extract_strided_slice %128 {offsets = [0, 64], sizes = [4, 16], strides = [1, 1]} : vector<4x128xf32> to vector<4x16xf32>
    %cst_58 = arith.constant dense<0.000000e+00> : vector<4x4xf32>
    %132 = tpu.matmul %129, %130, %cst_58 {dimension_numbers = #tpu.dot_dimension_numbers<[1], [1], [0], [0], [0, 0, 1, 0], [], []>} : vector<4x16xf32>, vector<4x16xf32>, vector<4x4xf32> -> vector<4x4xf32>
    %cst_59 = arith.constant 2.500000e-01 : f32
    %133 = vector.broadcast %cst_59 : f32 to vector<4x4xf32>
    %134 = arith.mulf %132, %133 : vector<4x4xf32>
    %135 = arith.addf %134, %116 : vector<4x4xf32>
    %cst_60 = arith.constant dense<0xFF800000> : vector<4xf32>
    %136 = vector.multi_reduction <maximumf>, %135, %cst_60 [1] : vector<4x4xf32> to vector<4xf32>
    %137 = vector.shape_cast %136 : vector<4xf32> to vector<4x1xf32>
    %138 = vector.broadcast %137 : vector<4x1xf32> to vector<4x4xf32>
    %139 = arith.subf %135, %138 : vector<4x4xf32>
    %140 = math.exp %139 : vector<4x4xf32>
    %cst_61 = arith.constant dense<0.000000e+00> : vector<4xf32>
    %141 = vector.multi_reduction <add>, %140, %cst_61 [1] : vector<4x4xf32> to vector<4xf32>
    %142 = vector.shape_cast %141 : vector<4xf32> to vector<4x1xf32>
    %143 = tpu.reciprocal %142 {approx = true} : vector<4x1xf32> -> vector<4x1xf32>
    %144 = vector.broadcast %143 : vector<4x1xf32> to vector<4x4xf32>
    %145 = arith.mulf %140, %144 : vector<4x4xf32>
    %cst_62 = arith.constant dense<0.000000e+00> : vector<4x16xf32>
    %146 = tpu.matmul %145, %131, %cst_62 {dimension_numbers = #tpu.dot_dimension_numbers<[1], [0], [0], [1], [0, 0, 1, 1], [], []>} : vector<4x4xf32>, vector<4x16xf32>, vector<4x16xf32> -> vector<4x16xf32>
    %147 = vector.extract_strided_slice %125 {offsets = [0, 0], sizes = [16, 128], strides = [1, 1]} : vector<32x128xf32> to vector<16x128xf32>
    %cst_63 = arith.constant dense<0.000000e+00> : vector<4x128xf32>
    %148 = tpu.matmul %146, %147, %cst_63 {dimension_numbers = #tpu.dot_dimension_numbers<[1], [0], [0], [1], [0, 0, 1, 1], [], []>} : vector<4x16xf32>, vector<16x128xf32>, vector<4x128xf32> -> vector<4x128xf32>
    %149 = vector.extract_strided_slice %127 {offsets = [0, 16], sizes = [4, 16], strides = [1, 1]} : vector<4x128xf32> to vector<4x16xf32>
    %150 = vector.extract_strided_slice %128 {offsets = [0, 48], sizes = [4, 16], strides = [1, 1]} : vector<4x128xf32> to vector<4x16xf32>
    %151 = vector.extract_strided_slice %128 {offsets = [0, 80], sizes = [4, 16], strides = [1, 1]} : vector<4x128xf32> to vector<4x16xf32>
    %cst_64 = arith.constant dense<0.000000e+00> : vector<4x4xf32>
    %152 = tpu.matmul %149, %150, %cst_64 {dimension_numbers = #tpu.dot_dimension_numbers<[1], [1], [0], [0], [0, 0, 1, 0], [], []>} : vector<4x16xf32>, vector<4x16xf32>, vector<4x4xf32> -> vector<4x4xf32>
    %cst_65 = arith.constant 2.500000e-01 : f32
    %153 = vector.broadcast %cst_65 : f32 to vector<4x4xf32>
    %154 = arith.mulf %152, %153 : vector<4x4xf32>
    %155 = arith.addf %154, %116 : vector<4x4xf32>
    %cst_66 = arith.constant dense<0xFF800000> : vector<4xf32>
    %156 = vector.multi_reduction <maximumf>, %155, %cst_66 [1] : vector<4x4xf32> to vector<4xf32>
    %157 = vector.shape_cast %156 : vector<4xf32> to vector<4x1xf32>
    %158 = vector.broadcast %157 : vector<4x1xf32> to vector<4x4xf32>
    %159 = arith.subf %155, %158 : vector<4x4xf32>
    %160 = math.exp %159 : vector<4x4xf32>
    %cst_67 = arith.constant dense<0.000000e+00> : vector<4xf32>
    %161 = vector.multi_reduction <add>, %160, %cst_67 [1] : vector<4x4xf32> to vector<4xf32>
    %162 = vector.shape_cast %161 : vector<4xf32> to vector<4x1xf32>
    %163 = tpu.reciprocal %162 {approx = true} : vector<4x1xf32> -> vector<4x1xf32>
    %164 = vector.broadcast %163 : vector<4x1xf32> to vector<4x4xf32>
    %165 = arith.mulf %160, %164 : vector<4x4xf32>
    %cst_68 = arith.constant dense<0.000000e+00> : vector<4x16xf32>
    %166 = tpu.matmul %165, %151, %cst_68 {dimension_numbers = #tpu.dot_dimension_numbers<[1], [0], [0], [1], [0, 0, 1, 1], [], []>} : vector<4x4xf32>, vector<4x16xf32>, vector<4x16xf32> -> vector<4x16xf32>
    %167 = vector.extract_strided_slice %125 {offsets = [16, 0], sizes = [16, 128], strides = [1, 1]} : vector<32x128xf32> to vector<16x128xf32>
    %cst_69 = arith.constant dense<0.000000e+00> : vector<4x128xf32>
    %168 = tpu.matmul %166, %167, %cst_69 {dimension_numbers = #tpu.dot_dimension_numbers<[1], [0], [0], [1], [0, 0, 1, 1], [], []>} : vector<4x16xf32>, vector<16x128xf32>, vector<4x128xf32> -> vector<4x128xf32>
    %169 = arith.addf %148, %168 : vector<4x128xf32>
    %170 = vector.extract_strided_slice %123 {offsets = [4, 0], sizes = [4, 128], strides = [1, 1]} : vector<8x128xf32> to vector<4x128xf32>
    %171 = vector.extract_strided_slice %123 {offsets = [4, 0], sizes = [4, 128], strides = [1, 1]} : vector<8x128xf32> to vector<4x128xf32>
    %172 = vector.extract_strided_slice %170 {offsets = [0, 0], sizes = [4, 16], strides = [1, 1]} : vector<4x128xf32> to vector<4x16xf32>
    %173 = vector.extract_strided_slice %171 {offsets = [0, 32], sizes = [4, 16], strides = [1, 1]} : vector<4x128xf32> to vector<4x16xf32>
    %174 = vector.extract_strided_slice %171 {offsets = [0, 64], sizes = [4, 16], strides = [1, 1]} : vector<4x128xf32> to vector<4x16xf32>
    %cst_70 = arith.constant dense<0.000000e+00> : vector<4x4xf32>
    %175 = tpu.matmul %172, %173, %cst_70 {dimension_numbers = #tpu.dot_dimension_numbers<[1], [1], [0], [0], [0, 0, 1, 0], [], []>} : vector<4x16xf32>, vector<4x16xf32>, vector<4x4xf32> -> vector<4x4xf32>
    %cst_71 = arith.constant 2.500000e-01 : f32
    %176 = vector.broadcast %cst_71 : f32 to vector<4x4xf32>
    %177 = arith.mulf %175, %176 : vector<4x4xf32>
    %178 = arith.addf %177, %116 : vector<4x4xf32>
    %cst_72 = arith.constant dense<0xFF800000> : vector<4xf32>
    %179 = vector.multi_reduction <maximumf>, %178, %cst_72 [1] : vector<4x4xf32> to vector<4xf32>
    %180 = vector.shape_cast %179 : vector<4xf32> to vector<4x1xf32>
    %181 = vector.broadcast %180 : vector<4x1xf32> to vector<4x4xf32>
    %182 = arith.subf %178, %181 : vector<4x4xf32>
    %183 = math.exp %182 : vector<4x4xf32>
    %cst_73 = arith.constant dense<0.000000e+00> : vector<4xf32>
    %184 = vector.multi_reduction <add>, %183, %cst_73 [1] : vector<4x4xf32> to vector<4xf32>
    %185 = vector.shape_cast %184 : vector<4xf32> to vector<4x1xf32>
    %186 = tpu.reciprocal %185 {approx = true} : vector<4x1xf32> -> vector<4x1xf32>
    %187 = vector.broadcast %186 : vector<4x1xf32> to vector<4x4xf32>
    %188 = arith.mulf %183, %187 : vector<4x4xf32>
    %cst_74 = arith.constant dense<0.000000e+00> : vector<4x16xf32>
    %189 = tpu.matmul %188, %174, %cst_74 {dimension_numbers = #tpu.dot_dimension_numbers<[1], [0], [0], [1], [0, 0, 1, 1], [], []>} : vector<4x4xf32>, vector<4x16xf32>, vector<4x16xf32> -> vector<4x16xf32>
    %190 = vector.extract_strided_slice %125 {offsets = [0, 0], sizes = [16, 128], strides = [1, 1]} : vector<32x128xf32> to vector<16x128xf32>
    %cst_75 = arith.constant dense<0.000000e+00> : vector<4x128xf32>
    %191 = tpu.matmul %189, %190, %cst_75 {dimension_numbers = #tpu.dot_dimension_numbers<[1], [0], [0], [1], [0, 0, 1, 1], [], []>} : vector<4x16xf32>, vector<16x128xf32>, vector<4x128xf32> -> vector<4x128xf32>
    %192 = vector.extract_strided_slice %170 {offsets = [0, 16], sizes = [4, 16], strides = [1, 1]} : vector<4x128xf32> to vector<4x16xf32>
    %193 = vector.extract_strided_slice %171 {offsets = [0, 48], sizes = [4, 16], strides = [1, 1]} : vector<4x128xf32> to vector<4x16xf32>
    %194 = vector.extract_strided_slice %171 {offsets = [0, 80], sizes = [4, 16], strides = [1, 1]} : vector<4x128xf32> to vector<4x16xf32>
    %cst_76 = arith.constant dense<0.000000e+00> : vector<4x4xf32>
    %195 = tpu.matmul %192, %193, %cst_76 {dimension_numbers = #tpu.dot_dimension_numbers<[1], [1], [0], [0], [0, 0, 1, 0], [], []>} : vector<4x16xf32>, vector<4x16xf32>, vector<4x4xf32> -> vector<4x4xf32>
    %cst_77 = arith.constant 2.500000e-01 : f32
    %196 = vector.broadcast %cst_77 : f32 to vector<4x4xf32>
    %197 = arith.mulf %195, %196 : vector<4x4xf32>
    %198 = arith.addf %197, %116 : vector<4x4xf32>
    %cst_78 = arith.constant dense<0xFF800000> : vector<4xf32>
    %199 = vector.multi_reduction <maximumf>, %198, %cst_78 [1] : vector<4x4xf32> to vector<4xf32>
    %200 = vector.shape_cast %199 : vector<4xf32> to vector<4x1xf32>
    %201 = vector.broadcast %200 : vector<4x1xf32> to vector<4x4xf32>
    %202 = arith.subf %198, %201 : vector<4x4xf32>
    %203 = math.exp %202 : vector<4x4xf32>
    %cst_79 = arith.constant dense<0.000000e+00> : vector<4xf32>
    %204 = vector.multi_reduction <add>, %203, %cst_79 [1] : vector<4x4xf32> to vector<4xf32>
    %205 = vector.shape_cast %204 : vector<4xf32> to vector<4x1xf32>
    %206 = tpu.reciprocal %205 {approx = true} : vector<4x1xf32> -> vector<4x1xf32>
    %207 = vector.broadcast %206 : vector<4x1xf32> to vector<4x4xf32>
    %208 = arith.mulf %203, %207 : vector<4x4xf32>
    %cst_80 = arith.constant dense<0.000000e+00> : vector<4x16xf32>
    %209 = tpu.matmul %208, %194, %cst_80 {dimension_numbers = #tpu.dot_dimension_numbers<[1], [0], [0], [1], [0, 0, 1, 1], [], []>} : vector<4x4xf32>, vector<4x16xf32>, vector<4x16xf32> -> vector<4x16xf32>
    %210 = vector.extract_strided_slice %125 {offsets = [16, 0], sizes = [16, 128], strides = [1, 1]} : vector<32x128xf32> to vector<16x128xf32>
    %cst_81 = arith.constant dense<0.000000e+00> : vector<4x128xf32>
    %211 = tpu.matmul %209, %210, %cst_81 {dimension_numbers = #tpu.dot_dimension_numbers<[1], [0], [0], [1], [0, 0, 1, 1], [], []>} : vector<4x16xf32>, vector<16x128xf32>, vector<4x128xf32> -> vector<4x128xf32>
    %212 = arith.addf %191, %211 : vector<4x128xf32>
    %213 = tpu.concatenate %169, %212 in 0 : vector<4x128xf32>, vector<4x128xf32> -> vector<8x128xf32>
    %214 = vector.broadcast %126 : vector<1x128xf32> to vector<8x128xf32>
    %215 = arith.addf %213, %214 : vector<8x128xf32>
    %216 = vector.extract_strided_slice %215 {offsets = [0, 0], sizes = [8, 32], strides = [1, 1]} : vector<8x128xf32> to vector<8x32xf32>
    %c5 = arith.constant 5 : index
    %c0_82 = arith.constant 0 : index
    %c0_83 = arith.constant 0 : index
    %217 = vector.load %arg2[%c5, %c0_82, %c0_83] : memref<9x32x128xf32, #tpu.memory_space<vmem>>, vector<1x32x128xf32>
    %218 = vector.shape_cast %217 : vector<1x32x128xf32> to vector<32x128xf32>
    %cst_84 = arith.constant dense<0.000000e+00> : vector<8x128xf32>
    %219 = tpu.matmul %216, %218, %cst_84 {dimension_numbers = #tpu.dot_dimension_numbers<[1], [0], [0], [1], [0, 0, 1, 1], [], []>} : vector<8x32xf32>, vector<32x128xf32>, vector<8x128xf32> -> vector<8x128xf32>
    %c5_85 = arith.constant 5 : index
    %c0_86 = arith.constant 0 : index
    %220 = vector.load %arg4[%c5_85, %c0_86] : memref<11x128xf32, #tpu.memory_space<vmem>>, vector<1x128xf32>
    %221 = vector.broadcast %220 : vector<1x128xf32> to vector<8x128xf32>
    %222 = arith.addf %219, %221 : vector<8x128xf32>
    %223 = vector.extract_strided_slice %110 {offsets = [0, 0], sizes = [16, 32], strides = [1, 1]} : vector<16x128xf32> to vector<16x32xf32>
    %c6 = arith.constant 6 : index
    %c0_87 = arith.constant 0 : index
    %c0_88 = arith.constant 0 : index
    %224 = vector.load %arg2[%c6, %c0_87, %c0_88] : memref<9x32x128xf32, #tpu.memory_space<vmem>>, vector<1x32x128xf32>
    %225 = vector.shape_cast %224 : vector<1x32x128xf32> to vector<32x128xf32>
    %cst_89 = arith.constant dense<0.000000e+00> : vector<16x128xf32>
    %226 = tpu.matmul %223, %225, %cst_89 {dimension_numbers = #tpu.dot_dimension_numbers<[1], [0], [0], [1], [0, 0, 1, 1], [], []>} : vector<16x32xf32>, vector<32x128xf32>, vector<16x128xf32> -> vector<16x128xf32>
    %c6_90 = arith.constant 6 : index
    %c0_91 = arith.constant 0 : index
    %227 = vector.load %arg4[%c6_90, %c0_91] : memref<11x128xf32, #tpu.memory_space<vmem>>, vector<1x128xf32>
    %228 = vector.broadcast %227 : vector<1x128xf32> to vector<16x128xf32>
    %229 = arith.addf %226, %228 : vector<16x128xf32>
    %c7 = arith.constant 7 : index
    %c0_92 = arith.constant 0 : index
    %c0_93 = arith.constant 0 : index
    %230 = vector.load %arg2[%c7, %c0_92, %c0_93] : memref<9x32x128xf32, #tpu.memory_space<vmem>>, vector<1x32x128xf32>
    %231 = vector.shape_cast %230 : vector<1x32x128xf32> to vector<32x128xf32>
    %c7_94 = arith.constant 7 : index
    %c0_95 = arith.constant 0 : index
    %232 = vector.load %arg4[%c7_94, %c0_95] : memref<11x128xf32, #tpu.memory_space<vmem>>, vector<1x128xf32>
    %233 = vector.extract_strided_slice %222 {offsets = [0, 0], sizes = [4, 128], strides = [1, 1]} : vector<8x128xf32> to vector<4x128xf32>
    %234 = vector.extract_strided_slice %229 {offsets = [0, 0], sizes = [8, 128], strides = [1, 1]} : vector<16x128xf32> to vector<8x128xf32>
    %235 = vector.extract_strided_slice %233 {offsets = [0, 0], sizes = [4, 16], strides = [1, 1]} : vector<4x128xf32> to vector<4x16xf32>
    %236 = vector.extract_strided_slice %234 {offsets = [0, 0], sizes = [8, 16], strides = [1, 1]} : vector<8x128xf32> to vector<8x16xf32>
    %237 = vector.extract_strided_slice %234 {offsets = [0, 32], sizes = [8, 16], strides = [1, 1]} : vector<8x128xf32> to vector<8x16xf32>
    %cst_96 = arith.constant dense<0.000000e+00> : vector<4x8xf32>
    %238 = tpu.matmul %235, %236, %cst_96 {dimension_numbers = #tpu.dot_dimension_numbers<[1], [1], [0], [0], [0, 0, 1, 0], [], []>} : vector<4x16xf32>, vector<8x16xf32>, vector<4x8xf32> -> vector<4x8xf32>
    %cst_97 = arith.constant 2.500000e-01 : f32
    %239 = vector.broadcast %cst_97 : f32 to vector<4x8xf32>
    %240 = arith.mulf %238, %239 : vector<4x8xf32>
    %cst_98 = arith.constant dense<0xFF800000> : vector<4xf32>
    %241 = vector.multi_reduction <maximumf>, %240, %cst_98 [1] : vector<4x8xf32> to vector<4xf32>
    %242 = vector.shape_cast %241 : vector<4xf32> to vector<4x1xf32>
    %243 = vector.broadcast %242 : vector<4x1xf32> to vector<4x8xf32>
    %244 = arith.subf %240, %243 : vector<4x8xf32>
    %245 = math.exp %244 : vector<4x8xf32>
    %cst_99 = arith.constant dense<0.000000e+00> : vector<4xf32>
    %246 = vector.multi_reduction <add>, %245, %cst_99 [1] : vector<4x8xf32> to vector<4xf32>
    %247 = vector.shape_cast %246 : vector<4xf32> to vector<4x1xf32>
    %248 = tpu.reciprocal %247 {approx = true} : vector<4x1xf32> -> vector<4x1xf32>
    %249 = vector.broadcast %248 : vector<4x1xf32> to vector<4x8xf32>
    %250 = arith.mulf %245, %249 : vector<4x8xf32>
    %cst_100 = arith.constant dense<0.000000e+00> : vector<4x16xf32>
    %251 = tpu.matmul %250, %237, %cst_100 {dimension_numbers = #tpu.dot_dimension_numbers<[1], [0], [0], [1], [0, 0, 1, 1], [], []>} : vector<4x8xf32>, vector<8x16xf32>, vector<4x16xf32> -> vector<4x16xf32>
    %252 = vector.extract_strided_slice %231 {offsets = [0, 0], sizes = [16, 128], strides = [1, 1]} : vector<32x128xf32> to vector<16x128xf32>
    %cst_101 = arith.constant dense<0.000000e+00> : vector<4x128xf32>
    %253 = tpu.matmul %251, %252, %cst_101 {dimension_numbers = #tpu.dot_dimension_numbers<[1], [0], [0], [1], [0, 0, 1, 1], [], []>} : vector<4x16xf32>, vector<16x128xf32>, vector<4x128xf32> -> vector<4x128xf32>
    %254 = vector.extract_strided_slice %233 {offsets = [0, 16], sizes = [4, 16], strides = [1, 1]} : vector<4x128xf32> to vector<4x16xf32>
    %255 = vector.extract_strided_slice %234 {offsets = [0, 16], sizes = [8, 16], strides = [1, 1]} : vector<8x128xf32> to vector<8x16xf32>
    %256 = vector.extract_strided_slice %234 {offsets = [0, 48], sizes = [8, 16], strides = [1, 1]} : vector<8x128xf32> to vector<8x16xf32>
    %cst_102 = arith.constant dense<0.000000e+00> : vector<4x8xf32>
    %257 = tpu.matmul %254, %255, %cst_102 {dimension_numbers = #tpu.dot_dimension_numbers<[1], [1], [0], [0], [0, 0, 1, 0], [], []>} : vector<4x16xf32>, vector<8x16xf32>, vector<4x8xf32> -> vector<4x8xf32>
    %cst_103 = arith.constant 2.500000e-01 : f32
    %258 = vector.broadcast %cst_103 : f32 to vector<4x8xf32>
    %259 = arith.mulf %257, %258 : vector<4x8xf32>
    %cst_104 = arith.constant dense<0xFF800000> : vector<4xf32>
    %260 = vector.multi_reduction <maximumf>, %259, %cst_104 [1] : vector<4x8xf32> to vector<4xf32>
    %261 = vector.shape_cast %260 : vector<4xf32> to vector<4x1xf32>
    %262 = vector.broadcast %261 : vector<4x1xf32> to vector<4x8xf32>
    %263 = arith.subf %259, %262 : vector<4x8xf32>
    %264 = math.exp %263 : vector<4x8xf32>
    %cst_105 = arith.constant dense<0.000000e+00> : vector<4xf32>
    %265 = vector.multi_reduction <add>, %264, %cst_105 [1] : vector<4x8xf32> to vector<4xf32>
    %266 = vector.shape_cast %265 : vector<4xf32> to vector<4x1xf32>
    %267 = tpu.reciprocal %266 {approx = true} : vector<4x1xf32> -> vector<4x1xf32>
    %268 = vector.broadcast %267 : vector<4x1xf32> to vector<4x8xf32>
    %269 = arith.mulf %264, %268 : vector<4x8xf32>
    %cst_106 = arith.constant dense<0.000000e+00> : vector<4x16xf32>
    %270 = tpu.matmul %269, %256, %cst_106 {dimension_numbers = #tpu.dot_dimension_numbers<[1], [0], [0], [1], [0, 0, 1, 1], [], []>} : vector<4x8xf32>, vector<8x16xf32>, vector<4x16xf32> -> vector<4x16xf32>
    %271 = vector.extract_strided_slice %231 {offsets = [16, 0], sizes = [16, 128], strides = [1, 1]} : vector<32x128xf32> to vector<16x128xf32>
    %cst_107 = arith.constant dense<0.000000e+00> : vector<4x128xf32>
    %272 = tpu.matmul %270, %271, %cst_107 {dimension_numbers = #tpu.dot_dimension_numbers<[1], [0], [0], [1], [0, 0, 1, 1], [], []>} : vector<4x16xf32>, vector<16x128xf32>, vector<4x128xf32> -> vector<4x128xf32>
    %273 = arith.addf %253, %272 : vector<4x128xf32>
    %274 = vector.extract_strided_slice %222 {offsets = [4, 0], sizes = [4, 128], strides = [1, 1]} : vector<8x128xf32> to vector<4x128xf32>
    %275 = vector.extract_strided_slice %229 {offsets = [8, 0], sizes = [8, 128], strides = [1, 1]} : vector<16x128xf32> to vector<8x128xf32>
    %276 = vector.extract_strided_slice %274 {offsets = [0, 0], sizes = [4, 16], strides = [1, 1]} : vector<4x128xf32> to vector<4x16xf32>
    %277 = vector.extract_strided_slice %275 {offsets = [0, 0], sizes = [8, 16], strides = [1, 1]} : vector<8x128xf32> to vector<8x16xf32>
    %278 = vector.extract_strided_slice %275 {offsets = [0, 32], sizes = [8, 16], strides = [1, 1]} : vector<8x128xf32> to vector<8x16xf32>
    %cst_108 = arith.constant dense<0.000000e+00> : vector<4x8xf32>
    %279 = tpu.matmul %276, %277, %cst_108 {dimension_numbers = #tpu.dot_dimension_numbers<[1], [1], [0], [0], [0, 0, 1, 0], [], []>} : vector<4x16xf32>, vector<8x16xf32>, vector<4x8xf32> -> vector<4x8xf32>
    %cst_109 = arith.constant 2.500000e-01 : f32
    %280 = vector.broadcast %cst_109 : f32 to vector<4x8xf32>
    %281 = arith.mulf %279, %280 : vector<4x8xf32>
    %cst_110 = arith.constant dense<0xFF800000> : vector<4xf32>
    %282 = vector.multi_reduction <maximumf>, %281, %cst_110 [1] : vector<4x8xf32> to vector<4xf32>
    %283 = vector.shape_cast %282 : vector<4xf32> to vector<4x1xf32>
    %284 = vector.broadcast %283 : vector<4x1xf32> to vector<4x8xf32>
    %285 = arith.subf %281, %284 : vector<4x8xf32>
    %286 = math.exp %285 : vector<4x8xf32>
    %cst_111 = arith.constant dense<0.000000e+00> : vector<4xf32>
    %287 = vector.multi_reduction <add>, %286, %cst_111 [1] : vector<4x8xf32> to vector<4xf32>
    %288 = vector.shape_cast %287 : vector<4xf32> to vector<4x1xf32>
    %289 = tpu.reciprocal %288 {approx = true} : vector<4x1xf32> -> vector<4x1xf32>
    %290 = vector.broadcast %289 : vector<4x1xf32> to vector<4x8xf32>
    %291 = arith.mulf %286, %290 : vector<4x8xf32>
    %cst_112 = arith.constant dense<0.000000e+00> : vector<4x16xf32>
    %292 = tpu.matmul %291, %278, %cst_112 {dimension_numbers = #tpu.dot_dimension_numbers<[1], [0], [0], [1], [0, 0, 1, 1], [], []>} : vector<4x8xf32>, vector<8x16xf32>, vector<4x16xf32> -> vector<4x16xf32>
    %293 = vector.extract_strided_slice %231 {offsets = [0, 0], sizes = [16, 128], strides = [1, 1]} : vector<32x128xf32> to vector<16x128xf32>
    %cst_113 = arith.constant dense<0.000000e+00> : vector<4x128xf32>
    %294 = tpu.matmul %292, %293, %cst_113 {dimension_numbers = #tpu.dot_dimension_numbers<[1], [0], [0], [1], [0, 0, 1, 1], [], []>} : vector<4x16xf32>, vector<16x128xf32>, vector<4x128xf32> -> vector<4x128xf32>
    %295 = vector.extract_strided_slice %274 {offsets = [0, 16], sizes = [4, 16], strides = [1, 1]} : vector<4x128xf32> to vector<4x16xf32>
    %296 = vector.extract_strided_slice %275 {offsets = [0, 16], sizes = [8, 16], strides = [1, 1]} : vector<8x128xf32> to vector<8x16xf32>
    %297 = vector.extract_strided_slice %275 {offsets = [0, 48], sizes = [8, 16], strides = [1, 1]} : vector<8x128xf32> to vector<8x16xf32>
    %cst_114 = arith.constant dense<0.000000e+00> : vector<4x8xf32>
    %298 = tpu.matmul %295, %296, %cst_114 {dimension_numbers = #tpu.dot_dimension_numbers<[1], [1], [0], [0], [0, 0, 1, 0], [], []>} : vector<4x16xf32>, vector<8x16xf32>, vector<4x8xf32> -> vector<4x8xf32>
    %cst_115 = arith.constant 2.500000e-01 : f32
    %299 = vector.broadcast %cst_115 : f32 to vector<4x8xf32>
    %300 = arith.mulf %298, %299 : vector<4x8xf32>
    %cst_116 = arith.constant dense<0xFF800000> : vector<4xf32>
    %301 = vector.multi_reduction <maximumf>, %300, %cst_116 [1] : vector<4x8xf32> to vector<4xf32>
    %302 = vector.shape_cast %301 : vector<4xf32> to vector<4x1xf32>
    %303 = vector.broadcast %302 : vector<4x1xf32> to vector<4x8xf32>
    %304 = arith.subf %300, %303 : vector<4x8xf32>
    %305 = math.exp %304 : vector<4x8xf32>
    %cst_117 = arith.constant dense<0.000000e+00> : vector<4xf32>
    %306 = vector.multi_reduction <add>, %305, %cst_117 [1] : vector<4x8xf32> to vector<4xf32>
    %307 = vector.shape_cast %306 : vector<4xf32> to vector<4x1xf32>
    %308 = tpu.reciprocal %307 {approx = true} : vector<4x1xf32> -> vector<4x1xf32>
    %309 = vector.broadcast %308 : vector<4x1xf32> to vector<4x8xf32>
    %310 = arith.mulf %305, %309 : vector<4x8xf32>
    %cst_118 = arith.constant dense<0.000000e+00> : vector<4x16xf32>
    %311 = tpu.matmul %310, %297, %cst_118 {dimension_numbers = #tpu.dot_dimension_numbers<[1], [0], [0], [1], [0, 0, 1, 1], [], []>} : vector<4x8xf32>, vector<8x16xf32>, vector<4x16xf32> -> vector<4x16xf32>
    %312 = vector.extract_strided_slice %231 {offsets = [16, 0], sizes = [16, 128], strides = [1, 1]} : vector<32x128xf32> to vector<16x128xf32>
    %cst_119 = arith.constant dense<0.000000e+00> : vector<4x128xf32>
    %313 = tpu.matmul %311, %312, %cst_119 {dimension_numbers = #tpu.dot_dimension_numbers<[1], [0], [0], [1], [0, 0, 1, 1], [], []>} : vector<4x16xf32>, vector<16x128xf32>, vector<4x128xf32> -> vector<4x128xf32>
    %314 = arith.addf %294, %313 : vector<4x128xf32>
    %315 = tpu.concatenate %273, %314 in 0 : vector<4x128xf32>, vector<4x128xf32> -> vector<8x128xf32>
    %316 = vector.broadcast %232 : vector<1x128xf32> to vector<8x128xf32>
    %317 = arith.addf %315, %316 : vector<8x128xf32>
    %318 = vector.extract_strided_slice %317 {offsets = [0, 0], sizes = [8, 32], strides = [1, 1]} : vector<8x128xf32> to vector<8x32xf32>
    %c8 = arith.constant 8 : index
    %c0_120 = arith.constant 0 : index
    %c0_121 = arith.constant 0 : index
    %319 = vector.load %arg2[%c8, %c0_120, %c0_121] : memref<9x32x128xf32, #tpu.memory_space<vmem>>, vector<1x32x128xf32>
    %320 = vector.shape_cast %319 : vector<1x32x128xf32> to vector<32x128xf32>
    %cst_122 = arith.constant dense<0.000000e+00> : vector<8x128xf32>
    %321 = tpu.matmul %318, %320, %cst_122 {dimension_numbers = #tpu.dot_dimension_numbers<[1], [0], [0], [1], [0, 0, 1, 1], [], []>} : vector<8x32xf32>, vector<32x128xf32>, vector<8x128xf32> -> vector<8x128xf32>
    %c8_123 = arith.constant 8 : index
    %c0_124 = arith.constant 0 : index
    %322 = vector.load %arg4[%c8_123, %c0_124] : memref<11x128xf32, #tpu.memory_space<vmem>>, vector<1x128xf32>
    %323 = vector.broadcast %322 : vector<1x128xf32> to vector<8x128xf32>
    %324 = arith.addf %321, %323 : vector<8x128xf32>
    %cst_125 = arith.constant 0.000000e+00 : f32
    %325 = vector.broadcast %cst_125 : f32 to vector<8x128xf32>
    %326 = arith.maximumf %324, %325 : vector<8x128xf32>
    %327 = vector.extract_strided_slice %326 {offsets = [0, 0], sizes = [8, 64], strides = [1, 1]} : vector<8x128xf32> to vector<8x64xf32>
    %c1_126 = arith.constant 1 : index
    %c0_127 = arith.constant 0 : index
    %c0_128 = arith.constant 0 : index
    %328 = vector.load %arg3[%c1_126, %c0_127, %c0_128] : memref<2x64x128xf32, #tpu.memory_space<vmem>>, vector<1x64x128xf32>
    %329 = vector.shape_cast %328 : vector<1x64x128xf32> to vector<64x128xf32>
    %cst_129 = arith.constant dense<0.000000e+00> : vector<8x128xf32>
    %330 = tpu.matmul %327, %329, %cst_129 {dimension_numbers = #tpu.dot_dimension_numbers<[1], [0], [0], [1], [0, 0, 1, 1], [], []>} : vector<8x64xf32>, vector<64x128xf32>, vector<8x128xf32> -> vector<8x128xf32>
    %c10 = arith.constant 10 : index
    %c0_130 = arith.constant 0 : index
    %331 = vector.load %arg4[%c10, %c0_130] : memref<11x128xf32, #tpu.memory_space<vmem>>, vector<1x128xf32>
    %332 = vector.broadcast %331 : vector<1x128xf32> to vector<8x128xf32>
    %333 = arith.addf %330, %332 : vector<8x128xf32>
    %c0_131 = arith.constant 0 : index
    %c0_132 = arith.constant 0 : index
    %334 = vector.load %arg5[%c0_131, %c0_132] : memref<8x128xf32, #tpu.memory_space<vmem>>, vector<8x128xf32>
    tpu.vector_store %arg5[%c0_131, %c0_132], %333 {strides = array<i32>} : memref<8x128xf32, #tpu.memory_space<vmem>>, vector<8x128xf32>,
    return
  }
}

</mosaic_0001>

<bundles_post_ra>
// kernel: tpu_custom_call.1
= control target key start
LH: loop header
LB: loop body
LE: loop exit
PB: predicated region body
PF: predicated region fallthrough
CT: control target
= control target key end

     0   :  { %10 = vsyncpa [#allocation3], 0  ;;  %s2016_s0 = inlined_call_operand.hbm [shape: f32[16,32], index: 0, kind: input, shape index: {}]   ;;  %s2017_s1 = inlined_call_operand.hbm [shape: f32[8,32], index: 1, kind: input, shape index: {}]   ;;  %s2018_s2 = inlined_call_operand.hbm [shape: f32[9,32,128], index: 2, kind: input, shape index: {}]   ;;  %s2019_s3 = inlined_call_operand.hbm [shape: f32[2,64,128], index: 3, kind: input, shape index: {}]   ;;  %s2020_s4 = inlined_call_operand.hbm [shape: f32[11,128], index: 4, kind: input, shape index: {}]   ;;  %s2021_s5 = inlined_call_operand.hbm [shape: f32[8,128], index: 5, kind: output, shape index: {}]  }
   0x1   :  { %11 = vsyncpa [#allocation6], 0 }
   0x2   :  { %12 = vsyncpa [#allocation9], 0  ;;  %s32_s20 = sshll.u32 %s2017_s1, 4  ;;  %s33_s20 = int_to_ptr.hbm [resolvable:$true] %s32_s20 }
   0x3   :  { %13 = vsyncpa [#allocation4], 0  ;;  %s1797_s21 = smov [#allocation5]   ;;  %s55_s25 = sshll.u32 %s2019_s3, 4  ;;  %s56_s25 = int_to_ptr.hbm [resolvable:$true] %s55_s25 }
   0x4   :  { %s34_s22 = sshll.u32 %s1797_s21, 4  ;;  %s1798_s26 = smov [#allocation8]   ;;  %s35_s22 = int_to_ptr.vmem [resolvable:$true] %s34_s22 }
   0x5   :  { %37 = dma.hbm_to_vmem [thread:$0]  %s33_s20, 128, %s35_s22, [#allocation6]  }
   0x6   :  { %s57_s27 = sshll.u32 %s1798_s26, 4  ;;  %s18_s30 = sshll.u32 %s2016_s0, 4  ;;  %s58_s27 = int_to_ptr.vmem [resolvable:$true] %s57_s27  ;;  %s19_s30 = int_to_ptr.hbm [resolvable:$true] %s18_s30 }
   0x7   :  { %s1799_s1 = smov 128   ;;  %s1800_s6 = smov 8  }
   0x8   :  { %63 = dma.hbm_to_vmem [thread:$0]  %s56_s25, 2048, %s58_s27, [#allocation9], %s1799_s1, %s1799_s1, %s1800_s6  }
   0x9   :  { %s42_s9 = sshll.u32 %s2018_s2, 4  ;;  %s1801_s10 = smov [#allocation2]   ;;  %s43_s9 = int_to_ptr.hbm [resolvable:$true] %s42_s9 }
   0xa   :  { %s20_s11 = sshll.u32 %s1801_s10, 4  ;;  %s1802_s3 = smov [#allocation7]   ;;  %s21_s11 = int_to_ptr.vmem [resolvable:$true] %s20_s11 }
   0xb   :  { %26 = dma.hbm_to_vmem [thread:$0]  %s19_s30, 256, %s21_s11, [#allocation3], %s1799_s1, %s1799_s1, %s1800_s6  }
   0xc   :  { %s44_s12 = sshll.u32 %s1802_s3, 4  ;;  %s68_s0 = sshll.u32 %s2020_s4, 4  ;;  %s45_s12 = int_to_ptr.vmem [resolvable:$true] %s44_s12  ;;  %s69_s0 = int_to_ptr.hbm [resolvable:$true] %s68_s0 }
   0xd   :  { %50 = dma.hbm_to_vmem [thread:$0]  %s43_s9, 4608, %s45_s12, [#allocation6], %s1799_s1, %s1799_s1, %s1800_s6  }
   0xe   :  { %s1803_s15 = smov [#allocation10]  }
   0xf   :  { %s70_s16 = sshll.u32 %s1803_s15, 4  ;;  %s71_s16 = int_to_ptr.vmem [resolvable:$true] %s70_s16 }
  0x10   :  { %76 = dma.hbm_to_vmem [thread:$0]  %s69_s0, 256, %s71_s16, [#allocation9], %s1799_s1, %s1799_s1, %s1800_s6  }
  0x11   :  { %1789 = dma.done.wait [#allocation3], 256  }
  0x12   :  { %1790 = vsyncadd [#allocation3], 4294967040 }
  0x13   :  { %1791 = dma.done.wait [#allocation6], 4736  }
  0x14   :  { %1792 = vsyncadd [#allocation6], 4294962560 }
  0x15   :  { %1793 = dma.done.wait [#allocation9], 2304  }
  0x16   :  { %1794 = vsyncadd [#allocation9], 4294964992  ;;  %v102_v0 = vld [vmem:[#allocation7 + $0x18] sm:$0xff]  ;;  %v101_v1 = vld [vmem:[#allocation7 + $0x10] sm:$0xff]  ;;  %vm105_vm0 = vcmask 261120   ;;  %s1804_s2 = smov 80  }
  0x17   :  { %124 = vmatpush.msra.mxu0 %v102_v0  ;;  %v100_v2 = vld [vmem:[#allocation7 + $0x8] sm:$0xff]  ;;  %v99_v3 = vld [vmem:[#allocation7] sm:$0xff]  ;;  %s1805_s4 = smov 96   ;;  %s1806_s17 = smov 112   ;;  %vm144_vm1 = vcmask 130048   ;;  %vm170_vm2 = vcmask 64512  }
  0x18   :  { %v97_v4 = vld [vmem:[#allocation2] sm:$0xff]  ;;  %v1586_v5 = vld [vmem:[#allocation10] ss:$0 sm:$0xff]  ;;  %s1807_s18 = smov 48   ;;  %v98_v15 = vld [vmem:[#allocation2 + $0x8] sm:$0xff]  ;;  %s1808_s19 = smov 64  }
  0x19   :  { %125 = vmatpush.msra.mxu0 %v101_v1  ;;  %v1879_v26 = vld [vmem:[#allocation7 + $0x28] sm:$0xff]  ;;  %v136_v28 = vld [vmem:[#allocation7 + $0x20] sm:$0xff]  ;;  %v139_v31 = vld [vmem:[#allocation7 + $0x38] sm:$0xff]  ;;  %vm548_vm3 = vcmask 523264   ;;  %vm668_vm4 = vcmask 1043456   ;;  %vm650_vm6 = vcmask 27648  }
  0x1a   :  { %v138_v32 = vld [vmem:[#allocation7 + $0x30] sm:$0xff]  ;;  %v504_v57 = vld [vmem:[#allocation7 + $0x58] sm:$0xff]  ;;  %vm664_vm7 = vcmask 31744   ;;  %vm1091_vm8 = vcmask 60416   ;;  %s1810_s20 = smov [#allocation11]   ;;  %s1496_s24 = sshll.u32 %s2021_s5, 4  ;;  %s1497_s24 = int_to_ptr.hbm [resolvable:$true] %s1496_s24 }
  0x1b   :  { %126 = vmatpush.msra.mxu0 %v100_v2  ;;  %v503_v1 = vld [vmem:[#allocation7 + $0x50] sm:$0xff]  ;;  %v502_v2 = vld [vmem:[#allocation7 + $0x48] sm:$0xff]  ;;  %s1494_s21 = sshll.u32 %s1810_s20, 4  ;;  %s1495_s21 = int_to_ptr.vmem [resolvable:$true] %s1494_s21 }
  0x1d   :  { %127 = vmatpush.msra.mxu0 %v99_v3  ;;  %v501_v3 = vld [vmem:[#allocation7 + $0x40] sm:$0xff] }
  0x1e   :  { %1508 = vmatmul.msk.f32.vlgmr.msra.gmra.mxu0 %vm105_vm0, %v97_v4  ;;  %v589_v4 = vld [vmem:[#allocation7 + $0x78] sm:$0xff] }
  0x26   :  { %1509 = vmatmul.msk.f32.gmra.mxu0 %vm105_vm0, %v98_v15 }
  0x9b   :  { %v129_v6 = vpop.f32.mrf.mxu0 }
  0x9c   :  { %v130_v7 = vadd.f32 %v1586_v5, %v129_v6  ;;  %v587_v6 = vld [vmem:[#allocation7 + $0x68] sm:$0xff] }
  0x9e   :  { %210 = vrot.lane.b32.xlu2 %v130_v7, %s1804_s2  ;;  %142 = vrot.lane.b32.xlu0 %v130_v7, %s1805_s4 }
  0xa3   :  { %v132_v19 = vpop.f32.mrf.mxu0 }
  0xa4   :  { %v1867_v20 = vadd.f32 %v1586_v5, %v132_v19  ;;  %v588_v5 = vld [vmem:[#allocation7 + $0x70] sm:$0xff] }
  0xa6   :  { %208 = vrot.lane.b32.xlu2 %v130_v7, %s1806_s17 }
  0xae   :  { %387 = vrot.lane.b32.xlu2 %v1867_v20, %s1804_s2 }
  0xb6   :  { %385 = vrot.lane.b32.xlu2 %v1867_v20, %s1806_s17 }
  0xf8   :  { %v211_v23 = vpop.permute.xlu2 %210 }
 0x100   :  { %v209_v27 = vpop.permute.xlu2 %208 }
 0x108   :  { %v388_v29 = vpop.permute.xlu2 %387 }
 0x110   :  { %v143_v8 = vpop.permute.xlu0 %142  ;;  %v386_v36 = vpop.permute.xlu2 %385 }
 0x111   :  { %1510 = vmatpush.xpose.msk.msra.mxu1 %vm144_vm1, %v143_v8  ;;  %v544_v8 = vld [vmem:[#allocation8 + $0x30] sm:$0xff] }
 0x114   :  { %1511 = vmatmul.msk.f32.vlgmr.msra.gmra.mxu1 %vm144_vm1, %v130_v7 }
 0x115   :  { %291 = vmatpush.msrb.mxu1 %v139_v31 }
 0x117   :  { %292 = vmatpush.msrb.mxu1 %v138_v32 }
 0x191   :  { %v166_v9 = vpop.f32.mrf.mxu1 }
 0x192   :  { %v169_v10 = vmul.f32 0.25, %v166_v9  ;;  %v586_v9 = vld [vmem:[#allocation7 + $0x60] sm:$0xff] }
 0x194   :  { %v171_v11 = vsel %vm170_vm2, %v169_v10, -inf }
 0x195   :  { %172 = vmax.xlane.f32.xlu0 %v171_v11 }
 0x1a9   :  { %248 = vrot.lane.b32.xlu0 %v130_v7, %s1807_s18 }
 0x1b1   :  { %321 = vrot.lane.b32.xlu0 %v1867_v20, %s1805_s4 }
 0x1b9   :  { %425 = vrot.lane.b32.xlu0 %v1867_v20, %s1807_s18 }
 0x1c1   :  { %359 = vrot.lane.b32.xlu0 %v1867_v20, %s1808_s19 }
 0x208   :  { %v173_v12 = vpop.xlane.xlu0 %172 }
 0x209   :  { %v174_v13 = vsub.f32 %v169_v10, %v173_v12  ;;  %v1900_v10 = vld [vmem:[#allocation10 + $0x1] ss:$0 sm:$0xff] }
 0x20b   :  { %v175_v14 = vmul.f32 1.442695, %v174_v13 }
 0x20d   :  { %1597 = vpow2.f32 %v175_v14 }
 0x213   :  { %v1598_v16 = vpop.eup %1597 }
 0x214   :  { %v177_v17 = vsel %vm170_vm2, %v1598_v16, 0.0 }
 0x215   :  { %178 = vadd.xlane.f32.xlu1 %v177_v17 }
 0x21b   :  { %v249_v18 = vpop.permute.xlu0 %248 }
 0x21c   :  { %269 = vmatpush.msra.mxu2 %v249_v18  ;;  %v584_v18 = vld [vmem:[#allocation5] sm:$0xff] }
 0x223   :  { %v322_v30 = vpop.permute.xlu0 %321 }
 0x224   :  { %1518 = vmatpush.xpose.msk.msrb.mxu2 %vm144_vm1, %v322_v30 }
 0x22b   :  { %v426_v33 = vpop.permute.xlu0 %425 }
 0x22c   :  { %446 = vmatpush.msrb.mxu0 %v426_v33 }
 0x22e   :  { %182 = vrot.lane.b32.xlu1 %v130_v7, %s1808_s19  ;;  %v545_v7 = vld [vmem:[#allocation8 + $0x38] sm:$0xff] }
 0x22f   :  { %563 = vmatpush.msra.mxu0 %v545_v7 }
 0x231   :  { %564 = vmatpush.msra.mxu0 %v544_v8 }
 0x233   :  { %v360_v34 = vpop.permute.xlu0 %359 }
 0x234   :  { %380 = vmatpush.msra.mxu1 %v360_v34  ;;  %v1589_v34 = vld [vmem:[#allocation10 + $0x3] ss:$0 sm:$0xff] }
 0x288   :  { %v179_v21 = vpop.xlane.xlu1 %178 }
 0x289   :  { %1599 = vrcp.f32 %v179_v21  ;;  %v543_v21 = vld [vmem:[#allocation8 + $0x28] sm:$0xff] }
 0x28a   :  { %565 = vmatpush.msra.mxu0 %v543_v21  ;;  %v616_v21 = vld [vmem:[#allocation7 + $0x80] sm:$0xff] }
 0x28f   :  { %v1600_v22 = vpop.eup %1599 }
 0x290   :  { %v181_v25 = vmul.f32 %v1600_v22, %v1598_v16  ;;  %v542_v22 = vld [vmem:[#allocation8 + $0x20] sm:$0xff] }
 0x291   :  { %566 = vmatpush.msra.mxu0 %v542_v22 }
 0x2a0   :  { %v183_v24 = vpop.permute.xlu1 %182 }
 0x2a1   :  { %203 = vmatpush.msra.mxu3 %v183_v24  ;;  %v540_v24 = vld [vmem:[#allocation8 + $0x10] sm:$0xff] }
 0x2a2   :  { %1512 = vmatmul.msk.f32.vlgmr.msra.gmra.mxu3 %vm170_vm2, %v181_v25  ;;  %v539_v25 = vld [vmem:[#allocation8 + $0x8] sm:$0xff] }
 0x2a3   :  { %1513 = vmatpush.xpose.msk.msrb.mxu3 %vm144_vm1, %v211_v23  ;;  %v541_v23 = vld [vmem:[#allocation8 + $0x18] sm:$0xff] }
 0x2a4   :  { %567 = vmatpush.msra.mxu0 %v541_v23 }
 0x2a6   :  { %568 = vmatpush.msra.mxu0 %v540_v24 }
 0x2a7   :  { %314 = vmatpush.msra.mxu3 %v1879_v26 }
 0x2a8   :  { %569 = vmatpush.msra.mxu0 %v539_v25 }
 0x2a9   :  { %315 = vmatpush.msra.mxu3 %v136_v28 }
 0x2aa   :  { %1514 = vmatmul.msk.f32.vlgmr.msrb.gmra.mxu3 %vm144_vm1, %v209_v27 }
 0x2ab   :  { %1521 = vmatpush.xpose.msk.msrb.mxu3 %vm144_vm1, %v388_v29  ;;  %v1588_v29 = vld [vmem:[#allocation10 + $0x2] ss:$0 sm:$0xff] }
 0x325   :  { %v205_v35 = vpop.f32.mrf.mxu3 }
 0x326   :  { %1517 = vmatmul.msk.f32.vlgmr.msra.gmra.mxu3 %vm144_vm1, %v205_v35 }
 0x327   :  { %525 = vmatpush.msra.mxu3 %v504_v57 }
 0x329   :  { %526 = vmatpush.msra.mxu3 %v503_v1 }
 0x32b   :  { %527 = vmatpush.msra.mxu3 %v502_v2 }
 0x32d   :  { %v233_v37 = vpop.f32.mrf.mxu3  ;;  %528 = vmatpush.msra.mxu3 %v501_v3 }
 0x32e   :  { %v236_v38 = vmul.f32 0.25, %v233_v37  ;;  %1522 = vmatmul.msk.f32.vlgmr.msrb.gmra.mxu3 %vm144_vm1, %v386_v36 }
 0x330   :  { %v237_v39 = vsel %vm170_vm2, %v236_v38, -inf }
 0x331   :  { %238 = vmax.xlane.f32.xlu2 %v237_v39 }
 0x3a4   :  { %v239_v40 = vpop.xlane.xlu2 %238 }
 0x3a5   :  { %v240_v41 = vsub.f32 %v236_v38, %v239_v40 }
 0x3a7   :  { %v241_v42 = vmul.f32 1.442695, %v240_v41 }
 0x3a9   :  { %1601 = vpow2.f32 %v241_v42  ;;  %v317_v43 = vpop.f32.mrf.mxu3 }
 0x3af   :  { %v1602_v44 = vpop.eup %1601 }
 0x3b0   :  { %v243_v45 = vsel %vm170_vm2, %v1602_v44, 0.0 }
 0x3b1   :  { %v410_v46 = vpop.f32.mrf.mxu3  ;;  %244 = vadd.xlane.f32.xlu1 %v243_v45 }
 0x3b2   :  { %v413_v47 = vmul.f32 0.25, %v410_v46 }
 0x3b4   :  { %v414_v48 = vsel %vm170_vm2, %v413_v47, -inf }
 0x3b5   :  { %415 = vmax.xlane.f32.xlu2 %v414_v48 }
 0x424   :  { %v245_v49 = vpop.xlane.xlu1 %244 }
 0x425   :  { %1603 = vrcp.f32 %v245_v49 }
 0x428   :  { %v416_v50 = vpop.xlane.xlu2 %415 }
 0x429   :  { %v417_v51 = vsub.f32 %v413_v47, %v416_v50  ;;  %v1809_v50 = vmov -1e+09  }
 0x42b   :  { %v1604_v52 = vpop.eup %1603  ;;  %v418_v53 = vmul.f32 1.442695, %v417_v51 }
 0x42c   :  { %v247_v54 = vmul.f32 %v1604_v52, %v1602_v44 }
 0x42d   :  { %1605 = vpow2.f32 %v418_v53 }
 0x42e   :  { %1515 = vmatmul.msk.f32.vlgmr.msra.gmra.mxu2 %vm170_vm2, %v247_v54 }
 0x42f   :  { %468 = vmatpush.msra.mxu2 %v139_v31 }
 0x431   :  { %469 = vmatpush.msra.mxu2 %v138_v32 }
 0x433   :  { %v1606_v55 = vpop.eup %1605 }
 0x434   :  { %v420_v56 = vsel %vm170_vm2, %v1606_v55, 0.0 }
 0x435   :  { %421 = vadd.xlane.f32.xlu1 %v420_v56 }
 0x436   :  { %1519 = vmatmul.msk.f32.vlgmr.msrb.gmra.mxu2 %vm144_vm1, %v1867_v20 }
 0x437   :  { %607 = vmatpush.msrb.mxu2 %v589_v4 }
 0x439   :  { %608 = vmatpush.msrb.mxu2 %v588_v5 }
 0x43b   :  { %609 = vmatpush.msrb.mxu2 %v587_v6 }
 0x43d   :  { %610 = vmatpush.msrb.mxu2 %v586_v9 }
 0x4a8   :  { %v422_v58 = vpop.xlane.xlu1 %421 }
 0x4a9   :  { %1607 = vrcp.f32 %v422_v58 }
 0x4af   :  { %v1608_v59 = vpop.eup %1607 }
 0x4b0   :  { %v424_v60 = vmul.f32 %v1608_v59, %v1606_v55 }
 0x4b1   :  { %v271_v61 = vpop.f32.mrf.mxu2 }
 0x4b2   :  { %1516 = vmatmul.msk.f32.vlgmr.msrb.gmra.mxu1 %vm144_vm1, %v271_v61  ;;  %1523 = vmatmul.msk.f32.vlgmr.msrb.gmra.mxu0 %vm170_vm2, %v424_v60 }
 0x4b3   :  { %491 = vmatpush.msrb.mxu1 %v1879_v26  ;;  %v538_v26 = vld [vmem:[#allocation8] sm:$0xff] }
 0x4b4   :  { %570 = vmatpush.msra.mxu0 %v538_v26 }
 0x4b5   :  { %492 = vmatpush.msrb.mxu1 %v136_v28 }
 0x4b9   :  { %v344_v62 = vpop.f32.mrf.mxu2 }
 0x4ba   :  { %v347_v63 = vmul.f32 0.25, %v344_v62 }
 0x4bc   :  { %v348_v0 = vsel %vm170_vm2, %v347_v63, -inf }
 0x4bd   :  { %349 = vmax.xlane.f32.xlu2 %v348_v0 }
 0x52f   :  { %v294_v11 = vpop.f32.mrf.mxu1  ;;  %v448_v12 = vpop.f32.mrf.mxu0 }
 0x530   :  { %v318_v13 = vadd.f32 %v317_v43, %v294_v11  ;;  %v350_v14 = vpop.xlane.xlu2 %349  ;;  %1524 = vmatmul.msk.f32.vlgmr.msra.gmra.mxu2 %vm144_vm1, %v448_v12  ;;  %v578_v43 = vlaneseq }
 0x531   :  { %v351_v15 = vsub.f32 %v347_v63, %v350_v14 }
 0x532   :  { %v498_v16 = vadd.f32 %v1900_v10, %v318_v13  ;;  %v579_v46 = vshrl.u32 %v578_v43, 7  ;;  %v581_v47 = vand.u32 127, %v578_v43 }
 0x533   :  { %v352_v17 = vmul.f32 1.442695, %v351_v15 }
 0x534   :  { %1526 = vmatmul.msk.f32.vlgmr.msra.gmra.mxu3 %vm105_vm0, %v498_v16  ;;  %vm582_vm5 = vcmp.le.s32.totalorder %v581_v47, %v579_v46  ;;  %v619_v16 = vld [vmem:[#allocation7 + $0x98] sm:$0xff] }
 0x535   :  { %1609 = vpow2.f32 %v352_v17  ;;  %v1921_v51 = vsel %vm582_vm5, 0.0, %v1809_v50  ;;  %v618_v17 = vld [vmem:[#allocation7 + $0x90] sm:$0xff] }
 0x536   :  { %v1025_v50 = vld [vmem:[#allocation7 + $0xd0] sm:$0xff] }
 0x538   :  { %1530 = vmatmul.msk.f32.vlgmr.msrb.gmra.mxu2 %vm105_vm0, %v584_v18 }
 0x53b   :  { %v1610_v19 = vpop.eup %1609 }
 0x53c   :  { %v354_v20 = vsel %vm170_vm2, %v1610_v19, 0.0 }
 0x53d   :  { %355 = vadd.xlane.f32.xlu1 %v354_v20  ;;  %v617_v20 = vld [vmem:[#allocation7 + $0x88] sm:$0xff] }
 0x5b0   :  { %v356_v27 = vpop.xlane.xlu1 %355 }
 0x5b1   :  { %1611 = vrcp.f32 %v356_v27 }
 0x5b3   :  { %v471_v28 = vpop.f32.mrf.mxu2 }
 0x5b7   :  { %v1612_v30 = vpop.eup %1611  ;;  %v530_v31 = vpop.f32.mrf.mxu3 }
 0x5b8   :  { %v358_v32 = vmul.f32 %v1612_v30, %v1610_v19  ;;  %v531_v33 = vadd.f32 %v1588_v29, %v530_v31 }
 0x5ba   :  { %v536_v35 = vmax.f32 %v531_v33, 0.0  ;;  %1520 = vmatmul.msk.f32.vlgmr.msra.gmra.mxu1 %vm170_vm2, %v358_v32 }
 0x5bb   :  { %v612_v36 = vpop.f32.mrf.mxu2 }
 0x5bc   :  { %1528 = vmatmul.msk.f32.vlgmr.msra.gmra.mxu0 %vm548_vm3, %v536_v35  ;;  %v613_v37 = vadd.f32 %v1589_v34, %v612_v36 }
 0x5be   :  { %693 = vrot.lane.b32.xlu1 %v613_v37, %s1804_s2  ;;  %691 = vrot.lane.b32.xlu0 %v613_v37, %s1806_s17  ;;  %v1927_v59 = vrot.slane %v613_v37, 4 }
 0x5bf   :  { %622 = vrot.lane.b32.xlu2 %v613_v37, %s1805_s4 }
 0x5c6   :  { %732 = vrot.lane.b32.xlu1 %v613_v37, %s1807_s18 }
 0x619   :  { %v623_v38 = vpop.permute.xlu2 %622 }
 0x61a   :  { %1531 = vmatpush.xpose.msk.msra.mxu1 %vm144_vm1, %v623_v38 }
 0x630   :  { %v694_v39 = vpop.permute.xlu1 %693  ;;  %v692_v42 = vpop.permute.xlu0 %691 }
 0x637   :  { %v382_v40 = vpop.f32.mrf.mxu1 }
 0x638   :  { %1525 = vmatmul.msk.f32.vlgmr.msrb.gmra.mxu1 %vm144_vm1, %v382_v40  ;;  %v733_v41 = vpop.permute.xlu1 %732 }
 0x639   :  { %1535 = vmatpush.xpose.msk.msrb.mxu1 %vm144_vm1, %v694_v39  ;;  %1537 = vmatpush.msk.msrb.mxu3 %vm668_vm4, %v733_v41 }
 0x640   :  { %1532 = vmatmul.msk.f32.vlgmr.msra.gmra.mxu1 %vm144_vm1, %v613_v37 }
 0x641   :  { %799 = vmatpush.msra.mxu1 %v617_v20 }
 0x643   :  { %800 = vmatpush.msra.mxu1 %v616_v21 }
 0x648   :  { %1536 = vmatmul.msk.f32.vlgmr.msrb.gmra.mxu1 %vm144_vm1, %v692_v42 }
 0x6b5   :  { %v494_v44 = vpop.f32.mrf.mxu1 }
 0x6b6   :  { %v495_v45 = vadd.f32 %v494_v44, %v471_v28 }
 0x6b8   :  { %v499_v48 = vadd.f32 %v1900_v10, %v495_v45 }
 0x6ba   :  { %1527 = vmatmul.msk.f32.gmra.mxu3 %vm105_vm0, %v499_v48 }
 0x6bd   :  { %v645_v49 = vpop.f32.mrf.mxu1 }
 0x6be   :  { %v648_v52 = vmul.f32 0.25, %v645_v49  ;;  %v1026_v49 = vld [vmem:[#allocation7 + $0xd8] sm:$0xff] }
 0x6c0   :  { %v649_v53 = vadd.f32 %v648_v52, %v1921_v51  ;;  %v1023_v52 = vld [vmem:[#allocation7 + $0xc0] sm:$0xff] }
 0x6c2   :  { %v651_v54 = vsel %vm650_vm6, %v649_v53, -inf }
 0x6c3   :  { %652 = vmax.xlane.f32.xlu1 %v651_v54 }
 0x6c5   :  { %v716_v55 = vpop.f32.mrf.mxu1 }
 0x6c6   :  { %v719_v56 = vmul.f32 0.25, %v716_v55 }
 0x6c8   :  { %v720_v57 = vadd.f32 %v719_v56, %v1921_v51 }
 0x6ca   :  { %v721_v58 = vsel %vm650_vm6, %v720_v57, -inf }
 0x6cb   :  { %722 = vmax.xlane.f32.xlu0 %v721_v58  ;;  %v1590_v58 = vld [vmem:[#allocation10 + $0x9] ss:$0 sm:$0xff] }
 0x6dc   :  { %872 = vrot.lane.b32.xlu1 %v1927_v59, %s1806_s17 }
 0x736   :  { %v653_v60 = vpop.xlane.xlu1 %652 }
 0x737   :  { %v654_v61 = vsub.f32 %v649_v53, %v653_v60  ;;  %v572_v53 = vpop.f32.mrf.mxu0 }
 0x738   :  { %v573_v60 = vadd.f32 %v1590_v58, %v572_v53  ;;  %v1060_v53 = vld [vmem:[#allocation7 + $0xe8] sm:$0xff] }
 0x739   :  { %v655_v62 = vmul.f32 1.442695, %v654_v61 }
 0x73b   :  { %1613 = vpow2.f32 %v655_v62  ;;  %v996_v62 = vld [vmem:[#allocation7 + $0xb8] sm:$0xff] }
 0x73d   :  { %v533_v63 = vpop.f32.mrf.mxu3 }
 0x73e   :  { %v534_v0 = vadd.f32 %v1588_v29, %v533_v63  ;;  %v723_v1 = vpop.xlane.xlu0 %722  ;;  %v995_v63 = vld [vmem:[#allocation7 + $0xb0] sm:$0xff] }
 0x73f   :  { %v724_v2 = vsub.f32 %v720_v57, %v723_v1  ;;  %v993_v1 = vld [vmem:[#allocation7 + $0xa0] sm:$0xff] }
 0x740   :  { %v537_v3 = vmax.f32 %v534_v0, 0.0  ;;  %v994_v0 = vld [vmem:[#allocation7 + $0xa8] sm:$0xff] }
 0x741   :  { %v1614_v4 = vpop.eup %1613  ;;  %v725_v5 = vmul.f32 1.442695, %v724_v2 }
 0x742   :  { %1529 = vmatmul.msk.f32.gmra.mxu0 %vm548_vm3, %v537_v3  ;;  %v657_v6 = vsel %vm650_vm6, %v1614_v4, 0.0 }
 0x743   :  { %1615 = vpow2.f32 %v725_v5  ;;  %658 = vadd.xlane.f32.xlu0 %v657_v6 }
 0x749   :  { %v1616_v7 = vpop.eup %1615 }
 0x74a   :  { %v727_v8 = vsel %vm650_vm6, %v1616_v7, 0.0 }
 0x74b   :  { %728 = vadd.xlane.f32.xlu2 %v727_v8 }
 0x74e   :  { %v873_v24 = vpop.permute.xlu1 %872 }
 0x757   :  { %662 = vrot.lane.b32.xlu0 %v613_v37, %s1808_s19 }
 0x75f   :  { %806 = vrot.lane.b32.xlu0 %v1927_v59, %s1805_s4 }
 0x763   :  { %874 = vrot.lane.b32.xlu2 %v1927_v59, %s1804_s2 }
 0x7b6   :  { %v659_v9 = vpop.xlane.xlu0 %658 }
 0x7be   :  { %v729_v10 = vpop.xlane.xlu2 %728 }
 0x7bf   :  { %1617 = vrcp.f32 %v729_v10  ;;  %v575_v56 = vpop.f32.mrf.mxu0 }
 0x7c0   :  { %1619 = vrcp.f32 %v659_v9  ;;  %v576_v61 = vadd.f32 %v1590_v58, %v575_v56 }
 0x7c5   :  { %v1618_v11 = vpop.eup %1617 }
 0x7c6   :  { %v1620_v12 = vpop.eup %1619  ;;  %v731_v13 = vmul.f32 %v1618_v11, %v1616_v7  ;;  %v875_v18 = vpop.permute.xlu2 %874 }
 0x7c7   :  { %v661_v14 = vmul.f32 %v1620_v12, %v1614_v4  ;;  %v1591_v4 = vld [vmem:[#allocation10 + $0x6] ss:$0 sm:$0xff] }
 0x7c8   :  { %1538 = vmatmul.msk.f32.vlgmr.msrb.gmra.mxu3 %vm664_vm7, %v731_v13 }
 0x7c9   :  { %v663_v15 = vpop.permute.xlu0 %662 }
 0x7ca   :  { %1533 = vmatpush.msk.msra.mxu2 %vm668_vm4, %v663_v15 }
 0x7cb   :  { %1534 = vmatmul.msk.f32.vlgmr.msra.gmra.mxu2 %vm664_vm7, %v661_v14  ;;  %v1592_v14 = vld [vmem:[#allocation10 + $0x4] ss:$0 sm:$0xff] }
 0x7cc   :  { %776 = vmatpush.msrb.mxu2 %v619_v16 }
 0x7ce   :  { %777 = vmatpush.msrb.mxu2 %v618_v17 }
 0x7d0   :  { %1545 = vmatpush.xpose.msk.msra.mxu2 %vm144_vm1, %v875_v18 }
 0x7d1   :  { %v807_v19 = vpop.permute.xlu0 %806 }
 0x7d2   :  { %1541 = vmatpush.xpose.msk.msra.mxu3 %vm144_vm1, %v807_v19  ;;  %v1593_v19 = vld [vmem:[#allocation10 + $0x5] ss:$0 sm:$0xff] }
 0x7d5   :  { %1542 = vmatmul.msk.f32.vlgmr.msra.gmra.mxu3 %vm144_vm1, %v1927_v59 }
 0x7d6   :  { %957 = vmatpush.msrb.mxu3 %v619_v16 }
 0x7d8   :  { %958 = vmatpush.msrb.mxu3 %v618_v17 }
 0x84b   :  { %v756_v22 = vpop.f32.mrf.mxu3 }
 0x84c   :  { %1539 = vmatmul.msk.f32.vlgmr.msrb.gmra.mxu2 %vm144_vm1, %v756_v22 }
 0x84d   :  { %1014 = vmatpush.msrb.mxu2 %v996_v62 }
 0x84e   :  { %v688_v23 = vpop.f32.mrf.mxu2 }
 0x84f   :  { %1540 = vmatmul.msk.f32.vlgmr.msra.gmra.mxu1 %vm144_vm1, %v688_v23  ;;  %1015 = vmatpush.msrb.mxu2 %v995_v63 }
 0x851   :  { %1016 = vmatpush.msrb.mxu2 %v994_v0 }
 0x853   :  { %1017 = vmatpush.msrb.mxu2 %v993_v1 }
 0x854   :  { %1546 = vmatmul.msk.f32.vlgmr.msra.gmra.mxu2 %vm144_vm1, %v873_v24 }
 0x858   :  { %v829_v25 = vpop.f32.mrf.mxu3 }
 0x859   :  { %v832_v26 = vmul.f32 0.25, %v829_v25 }
 0x85b   :  { %v833_v27 = vadd.f32 %v832_v26, %v1921_v51 }
 0x85d   :  { %v834_v28 = vsel %vm650_vm6, %v833_v27, -inf }
 0x85e   :  { %835 = vmax.xlane.f32.xlu0 %v834_v28 }
 0x872   :  { %913 = vrot.lane.b32.xlu0 %v1927_v59, %s1807_s18 }
 0x8cc   :  { %v802_v2 = vpop.f32.mrf.mxu1 }
 0x8cf   :  { %v1953_v29 = vpop.f32.mrf.mxu2 }
 0x8d0   :  { %v803_v15 = vadd.f32 %v802_v2, %v1953_v29 }
 0x8d1   :  { %v836_v30 = vpop.xlane.xlu0 %835 }
 0x8d2   :  { %v837_v31 = vsub.f32 %v833_v27, %v836_v30 }
 0x8d4   :  { %v838_v32 = vmul.f32 1.442695, %v837_v31 }
 0x8d6   :  { %1621 = vpow2.f32 %v838_v32 }
 0x8d7   :  { %v897_v33 = vpop.f32.mrf.mxu2 }
 0x8d8   :  { %v900_v34 = vmul.f32 0.25, %v897_v33 }
 0x8da   :  { %v901_v35 = vadd.f32 %v900_v34, %v1921_v51  ;;  %v1024_v51 = vld [vmem:[#allocation7 + $0xc8] sm:$0xff] }
 0x8dc   :  { %v902_v36 = vsel %vm650_vm6, %v901_v35, -inf  ;;  %v1622_v37 = vpop.eup %1621 }
 0x8dd   :  { %903 = vmax.xlane.f32.xlu2 %v902_v36  ;;  %v840_v39 = vsel %vm650_vm6, %v1622_v37, 0.0 }
 0x8e4   :  { %v914_v38 = vpop.permute.xlu0 %913 }
 0x8e5   :  { %841 = vadd.xlane.f32.xlu2 %v840_v39  ;;  %1547 = vmatpush.msk.msrb.mxu1 %vm668_vm4, %v914_v38 }
 0x8e7   :  { %1047 = vmatpush.msra.mxu1 %v1026_v49 }
 0x8e9   :  { %1048 = vmatpush.msra.mxu1 %v1025_v50 }
 0x8eb   :  { %1049 = vmatpush.msra.mxu1 %v1024_v51 }
 0x8ed   :  { %1050 = vmatpush.msra.mxu1 %v1023_v52 }
 0x8fd   :  { %845 = vrot.lane.b32.xlu2 %v1927_v59, %s1808_s19 }
 0x950   :  { %v904_v40 = vpop.xlane.xlu2 %903 }
 0x951   :  { %v905_v41 = vsub.f32 %v901_v35, %v904_v40 }
 0x953   :  { %v906_v42 = vmul.f32 1.442695, %v905_v41 }
 0x955   :  { %1623 = vpow2.f32 %v906_v42 }
 0x958   :  { %v842_v43 = vpop.xlane.xlu2 %841 }
 0x959   :  { %1625 = vrcp.f32 %v842_v43  ;;  %v1062_v43 = vld [vmem:[#allocation7 + $0xf8] sm:$0xff] }
 0x95b   :  { %v1624_v44 = vpop.eup %1623 }
 0x95c   :  { %v908_v45 = vsel %vm650_vm6, %v1624_v44, 0.0 }
 0x95d   :  { %909 = vadd.xlane.f32.xlu1 %v908_v45 }
 0x95f   :  { %v1626_v46 = vpop.eup %1625 }
 0x960   :  { %v844_v47 = vmul.f32 %v1626_v46, %v1622_v37  ;;  %v846_v48 = vpop.permute.xlu2 %845 }
 0x961   :  { %1543 = vmatpush.msk.msrb.mxu0 %vm668_vm4, %v846_v48 }
 0x962   :  { %1544 = vmatmul.msk.f32.vlgmr.msrb.gmra.mxu0 %vm664_vm7, %v844_v47 }
 0x963   :  { %980 = vmatpush.msra.mxu0 %v617_v20 }
 0x965   :  { %981 = vmatpush.msra.mxu0 %v616_v21 }
 0x9d0   :  { %v910_v54 = vpop.xlane.xlu1 %909 }
 0x9d1   :  { %1627 = vrcp.f32 %v910_v54 }
 0x9d7   :  { %v1628_v55 = vpop.eup %1627 }
 0x9d8   :  { %v912_v57 = vmul.f32 %v1628_v55, %v1624_v44  ;;  %v1061_v44 = vld [vmem:[#allocation7 + $0xf0] sm:$0xff] }
 0x9da   :  { %1548 = vmatmul.msk.f32.vlgmr.msrb.gmra.mxu1 %vm664_vm7, %v912_v57 }
 0x9df   :  { %v869_v59 = vpop.f32.mrf.mxu0 }
 0x9e0   :  { %1550 = vmatmul.msk.f32.vlgmr.msra.gmra.mxu0 %vm144_vm1, %v869_v59  ;;  %v1059_v59 = vld [vmem:[#allocation7 + $0xe0] sm:$0xff] }
 0x9e2   :  { %1552 = vmatmul.msk.f32.vlgmr.msra.gmra.mxu1 %vm105_vm0, %v573_v60 }
 0x9ea   :  { %1553 = vmatmul.msk.f32.gmra.mxu1 %vm105_vm0, %v576_v61 }
 0xa57   :  { %v937_v3 = vpop.f32.mrf.mxu1 }
 0xa58   :  { %1549 = vmatmul.msk.f32.vlgmr.msrb.gmra.mxu3 %vm144_vm1, %v937_v3 }
 0xa5d   :  { %v983_v10 = vpop.f32.mrf.mxu0 }
 0xa5f   :  { %v1052_v5 = vpop.f32.mrf.mxu1 }
 0xa60   :  { %v1053_v6 = vadd.f32 %v1591_v4, %v1052_v5 }
 0xa62   :  { %1131 = vrot.lane.b32.xlu1 %v1053_v6, %s1806_s17  ;;  %1554 = vmatpush.xpose.msk.msra.mxu3 %vm144_vm1, %v1053_v6 }
 0xa67   :  { %v1055_v7 = vpop.f32.mrf.mxu1 }
 0xa68   :  { %v1971_v8 = vadd.f32 %v1591_v4, %v1055_v7 }
 0xa6a   :  { %1562 = vmatpush.xpose.msk.msrb.mxu1 %vm144_vm1, %v1971_v8  ;;  %1169 = vrot.lane.b32.xlu1 %v1053_v6, %s1804_s2 }
 0xa6e   :  { %1388 = vmatpush.msra.mxu1 %v1062_v43 }
 0xa70   :  { %1389 = vmatpush.msra.mxu1 %v1061_v44 }
 0xad4   :  { %v1132_v9 = vpop.permute.xlu1 %1131 }
 0xad5   :  { %1557 = vmatpush.xpose.msk.msra.mxu2 %vm144_vm1, %v1132_v9 }
 0xadb   :  { %v960_v11 = vpop.f32.mrf.mxu3 }
 0xadc   :  { %v984_v12 = vadd.f32 %v983_v10, %v960_v11  ;;  %v1170_v13 = vpop.permute.xlu1 %1169 }
 0xadd   :  { %1190 = vmatpush.msrb.mxu3 %v1170_v13 }
 0xade   :  { %v987_v16 = vrot.slane %v984_v12, 4 }
 0xae0   :  { %v989_v17 = vsel %vm668_vm4, %v803_v15, %v987_v16 }
 0xae1   :  { %v991_v18 = vadd.f32 %v1592_v14, %v989_v17 }
 0xae3   :  { %1551 = vmatmul.msk.f32.vlgmr.msrb.gmra.mxu2 %vm105_vm0, %v991_v18 }
 0xae4   :  { %1235 = vmatpush.msrb.mxu2 %v1060_v53 }
 0xae6   :  { %1236 = vmatpush.msrb.mxu2 %v1059_v59 }
 0xb66   :  { %v1019_v20 = vpop.f32.mrf.mxu2 }
 0xb67   :  { %v1020_v21 = vadd.f32 %v1593_v19, %v1019_v20  ;;  %v1427_v20 = vld [vmem:[#allocation7 + $0x118] sm:$0xff] }
 0xb69   :  { %v1241_v22 = vrot.slane %v1020_v21, 4  ;;  %1129 = vrot.lane.b32.xlu0 %v1020_v21, %s1806_s17  ;;  %1555 = vmatmul.msk.f32.vlgmr.msra.gmra.mxu3 %vm144_vm1, %v1020_v21  ;;  %v1426_v21 = vld [vmem:[#allocation7 + $0x110] sm:$0xff] }
 0xb6b   :  { %1563 = vmatmul.msk.f32.vlgmr.msrb.gmra.mxu1 %vm144_vm1, %v1241_v22 }
 0xbdb   :  { %v1130_v23 = vpop.permute.xlu0 %1129 }
 0xbdc   :  { %1558 = vmatmul.msk.f32.vlgmr.msra.gmra.mxu2 %vm144_vm1, %v1130_v23  ;;  %v1462_v23 = vld [vmem:[#allocation8 + $0x78] sm:$0xff] }
 0xbe8   :  { %v1264_v40 = vpop.f32.mrf.mxu1 }
 0xbe9   :  { %v1267_v41 = vmul.f32 0.25, %v1264_v40 }
 0xbeb   :  { %v1268_v42 = vsel %vm1091_vm8, %v1267_v41, -inf }
 0xbec   :  { %v1087_v24 = vpop.f32.mrf.mxu3 }
 0xbed   :  { %v1090_v25 = vmul.f32 0.25, %v1087_v24  ;;  %v1461_v24 = vld [vmem:[#allocation8 + $0x70] sm:$0xff] }
 0xbef   :  { %v1092_v26 = vsel %vm1091_vm8, %v1090_v25, -inf }
 0xbf0   :  { %1093 = vmax.xlane.f32.xlu1 %v1092_v26  ;;  %v1459_v26 = vld [vmem:[#allocation8 + $0x60] sm:$0xff] }
 0xc09   :  { %1305 = vrot.lane.b32.xlu1 %v1241_v22, %s1806_s17  ;;  %v1424_v22 = vld [vmem:[#allocation7 + $0x100] sm:$0xff] }
 0xc5f   :  { %v1154_v27 = vpop.f32.mrf.mxu2 }
 0xc60   :  { %v1157_v28 = vmul.f32 0.25, %v1154_v27  ;;  %v1458_v27 = vld [vmem:[#allocation8 + $0x58] sm:$0xff] }
 0xc62   :  { %v1158_v29 = vsel %vm1091_vm8, %v1157_v28, -inf }
 0xc63   :  { %1159 = vmax.xlane.f32.xlu0 %v1158_v29  ;;  %v1094_v30 = vpop.xlane.xlu1 %1093 }
 0xc64   :  { %v1095_v31 = vsub.f32 %v1090_v25, %v1094_v30  ;;  %v1460_v25 = vld [vmem:[#allocation8 + $0x68] sm:$0xff] }
 0xc66   :  { %v1096_v32 = vmul.f32 1.442695, %v1095_v31  ;;  %v1594_v31 = vld [vmem:[#allocation10 + $0x7] ss:$0 sm:$0xff] }
 0xc68   :  { %1629 = vpow2.f32 %v1096_v32 }
 0xc6e   :  { %v1630_v33 = vpop.eup %1629 }
 0xc6f   :  { %v1098_v34 = vsel %vm1091_vm8, %v1630_v33, 0.0 }
 0xc70   :  { %1099 = vadd.xlane.f32.xlu0 %v1098_v34 }
 0xc7b   :  { %v1306_v62 = vpop.permute.xlu1 %1305 }
 0xc84   :  { %1307 = vrot.lane.b32.xlu0 %v1971_v8, %s1806_s17 }
 0xcd6   :  { %v1160_v35 = vpop.xlane.xlu0 %1159 }
 0xcd7   :  { %v1161_v36 = vsub.f32 %v1157_v28, %v1160_v35 }
 0xcd9   :  { %v1162_v37 = vmul.f32 1.442695, %v1161_v36  ;;  %v1457_v36 = vld [vmem:[#allocation8 + $0x50] sm:$0xff] }
 0xcdb   :  { %1631 = vpow2.f32 %v1162_v37  ;;  %v1456_v37 = vld [vmem:[#allocation8 + $0x48] sm:$0xff] }
 0xce1   :  { %v1632_v38 = vpop.eup %1631 }
 0xce2   :  { %v1164_v39 = vsel %vm1091_vm8, %v1632_v38, 0.0 }
 0xce3   :  { %1165 = vadd.xlane.f32.xlu2 %v1164_v39  ;;  %v1100_v45 = vpop.xlane.xlu0 %1099  ;;  %v1595_v39 = vld [vmem:[#allocation10 + $0x8] ss:$0 sm:$0xff] }
 0xce4   :  { %1633 = vrcp.f32 %v1100_v45 }
 0xcea   :  { %v1634_v47 = vpop.eup %1633 }
 0xceb   :  { %v1102_v49 = vmul.f32 %v1634_v47, %v1630_v33 }
 0xcf6   :  { %v1308_v52 = vpop.permute.xlu0 %1307 }
 0xcfb   :  { %1103 = vrot.lane.b32.xlu2 %v1053_v6, %s1805_s4 }
 0xd24   :  { %1269 = vmax.xlane.f32.xlu2 %v1268_v42 }
 0xd56   :  { %v1166_v46 = vpop.xlane.xlu2 %1165 }
 0xd57   :  { %1635 = vrcp.f32 %v1166_v46 }
 0xd5d   :  { %v1636_v48 = vpop.eup %1635 }
 0xd5e   :  { %v1168_v50 = vmul.f32 %v1636_v48, %v1632_v38  ;;  %v1104_v51 = vpop.permute.xlu2 %1103  ;;  %v1455_v38 = vld [vmem:[#allocation8 + $0x40] sm:$0xff] }
 0xd5f   :  { %1124 = vmatpush.msrb.mxu0 %v1104_v51 }
 0xd60   :  { %1556 = vmatmul.msk.f32.vlgmr.msrb.gmra.mxu0 %vm170_vm2, %v1102_v49  ;;  %1559 = vmatmul.msk.f32.vlgmr.msrb.gmra.mxu3 %vm170_vm2, %v1168_v50 }
 0xd61   :  { %1212 = vmatpush.msra.mxu0 %v1062_v43  ;;  %v1596_v43 = vld [vmem:[#allocation10 + $0xa] ss:$0 sm:$0xff] }
 0xd63   :  { %1213 = vmatpush.msra.mxu0 %v1061_v44 }
 0xd65   :  { %1565 = vmatpush.xpose.msk.msrb.mxu0 %vm144_vm1, %v1308_v52 }
 0xd97   :  { %v1270_v54 = vpop.xlane.xlu2 %1269 }
 0xd98   :  { %v1271_v55 = vsub.f32 %v1267_v41, %v1270_v54 }
 0xd9a   :  { %v1272_v56 = vmul.f32 1.442695, %v1271_v55 }
 0xd9c   :  { %1637 = vpow2.f32 %v1272_v56 }
 0xda2   :  { %v1638_v57 = vpop.eup %1637 }
 0xda3   :  { %v1274_v58 = vsel %vm1091_vm8, %v1638_v57, 0.0 }
 0xda4   :  { %1275 = vadd.xlane.f32.xlu1 %v1274_v58 }
 0xddd   :  { %v1126_v60 = vpop.f32.mrf.mxu0 }
 0xdde   :  { %1561 = vmatmul.msk.f32.vlgmr.msrb.gmra.mxu2 %vm144_vm1, %v1126_v60 }
 0xde3   :  { %v1192_v61 = vpop.f32.mrf.mxu3 }
 0xde4   :  { %1560 = vmatmul.msk.f32.vlgmr.msra.gmra.mxu0 %vm144_vm1, %v1192_v61 }
 0xde5   :  { %1445 = vmatpush.msra.mxu0 %v1427_v20 }
 0xde7   :  { %1446 = vmatpush.msra.mxu0 %v1426_v21 }
 0xdec   :  { %1566 = vmatmul.msk.f32.vlgmr.msrb.gmra.mxu0 %vm144_vm1, %v1306_v62 }
 0xe17   :  { %v1276_v6 = vpop.xlane.xlu1 %1275 }
 0xe61   :  { %v1215_v63 = vpop.f32.mrf.mxu0  ;;  %v1238_v18 = vpop.f32.mrf.mxu2 }
 0xe62   :  { %v1239_v32 = vadd.f32 %v1238_v18, %v1215_v63 }
 0xe69   :  { %v1330_v0 = vpop.f32.mrf.mxu0 }
 0xe6a   :  { %v1333_v1 = vmul.f32 0.25, %v1330_v0 }
 0xe6c   :  { %v1334_v2 = vsel %vm1091_vm8, %v1333_v1, -inf }
 0xe6d   :  { %1335 = vmax.xlane.f32.xlu0 %v1334_v2 }
 0xe81   :  { %1279 = vrot.lane.b32.xlu0 %v1971_v8, %s1805_s4 }
 0xee0   :  { %v1336_v3 = vpop.xlane.xlu0 %1335 }
 0xee1   :  { %v1337_v4 = vsub.f32 %v1333_v1, %v1336_v3 }
 0xee3   :  { %v1338_v5 = vmul.f32 1.442695, %v1337_v4 }
 0xee5   :  { %1639 = vpow2.f32 %v1338_v5 }
 0xee6   :  { %1641 = vrcp.f32 %v1276_v6 }
 0xeeb   :  { %v1640_v7 = vpop.eup %1639 }
 0xeec   :  { %v1340_v9 = vsel %vm1091_vm8, %v1640_v7, 0.0  ;;  %v1642_v10 = vpop.eup %1641 }
 0xeed   :  { %1341 = vadd.xlane.f32.xlu2 %v1340_v9  ;;  %v1278_v11 = vmul.f32 %v1642_v10, %v1638_v57 }
 0xef3   :  { %v1280_v12 = vpop.permute.xlu0 %1279 }
 0xef4   :  { %1300 = vmatpush.msra.mxu3 %v1280_v12 }
 0xef5   :  { %1564 = vmatmul.msk.f32.vlgmr.msra.gmra.mxu3 %vm170_vm2, %v1278_v11 }
 0xef6   :  { %1411 = vmatpush.msrb.mxu3 %v1060_v53 }
 0xef8   :  { %1412 = vmatpush.msrb.mxu3 %v1059_v59 }
 0xf05   :  { %1345 = vrot.lane.b32.xlu2 %v1971_v8, %s1804_s2  ;;  %v1425_v8 = vld [vmem:[#allocation7 + $0x108] sm:$0xff] }
 0xf06   :  { %1447 = vmatpush.msra.mxu0 %v1425_v8 }
 0xf08   :  { %1448 = vmatpush.msra.mxu0 %v1424_v22 }
 0xf60   :  { %v1342_v13 = vpop.xlane.xlu2 %1341 }
 0xf61   :  { %1643 = vrcp.f32 %v1342_v13 }
 0xf67   :  { %v1644_v14 = vpop.eup %1643 }
 0xf68   :  { %v1344_v15 = vmul.f32 %v1644_v14, %v1640_v7  ;;  %v1346_v16 = vpop.permute.xlu2 %1345 }
 0xf69   :  { %1366 = vmatpush.msra.mxu2 %v1346_v16 }
 0xf6a   :  { %1567 = vmatmul.msk.f32.vlgmr.msra.gmra.mxu2 %vm170_vm2, %v1344_v15 }
 0xf6b   :  { %1476 = vmatpush.msrb.mxu2 %v1462_v23 }
 0xf6d   :  { %1477 = vmatpush.msrb.mxu2 %v1461_v24 }
 0xf6f   :  { %1478 = vmatpush.msrb.mxu2 %v1460_v25 }
 0xf71   :  { %1479 = vmatpush.msrb.mxu2 %v1459_v26 }
 0xf73   :  { %1480 = vmatpush.msrb.mxu2 %v1458_v27 }
 0xf75   :  { %1481 = vmatpush.msrb.mxu2 %v1457_v36 }
 0xf77   :  { %1482 = vmatpush.msrb.mxu2 %v1456_v37 }
 0xf78   :  { %v1302_v17 = vpop.f32.mrf.mxu3 }
 0xf79   :  { %1569 = vmatmul.msk.f32.vlgmr.msrb.gmra.mxu3 %vm144_vm1, %v1302_v17  ;;  %1483 = vmatpush.msrb.mxu2 %v1455_v38 }
 0xfed   :  { %v1368_v19 = vpop.f32.mrf.mxu2 }
 0xfee   :  { %1568 = vmatmul.msk.f32.vlgmr.msra.gmra.mxu1 %vm144_vm1, %v1368_v19 }
 0xffc   :  { %v1414_v28 = vpop.f32.mrf.mxu3 }
0x106b   :  { %v1391_v29 = vpop.f32.mrf.mxu1 }
0x106c   :  { %v1415_v30 = vadd.f32 %v1414_v28, %v1391_v29 }
0x106e   :  { %v1418_v33 = vrot.slane %v1415_v30, 4 }
0x1070   :  { %v1420_v34 = vsel %vm668_vm4, %v1239_v32, %v1418_v33 }
0x1071   :  { %v1422_v35 = vadd.f32 %v1594_v31, %v1420_v34 }
0x1073   :  { %1570 = vmatmul.msk.f32.vlgmr.msra.gmra.mxu0 %vm105_vm0, %v1422_v35 }
0x10f0   :  { %v1450_v40 = vpop.f32.mrf.mxu0 }
0x10f1   :  { %v1451_v41 = vadd.f32 %v1595_v39, %v1450_v40 }
0x10f3   :  { %v1453_v42 = vmax.f32 %v1451_v41, 0.0 }
0x10f5   :  { %1571 = vmatmul.msk.f32.vlgmr.msrb.gmra.mxu2 %vm548_vm3, %v1453_v42 }
0x1178   :  { %v1485_v44 = vpop.f32.mrf.mxu2 }
0x1179   :  { %v1486_v45 = vadd.f32 %v1596_v43, %v1485_v44 }
0x117b   :  { %1488 = vst [vmem:[#allocation11] sm:$0xff] %v1486_v45 }
0x117c   :  { %1499 = dma.vmem_to_hbm [thread:$0]  %s1495_s21, 128, %s1497_s24, [#allocation4]  }
0x117d   :  { %1795 = dma.done.wait [#allocation4], 128  }
0x117e   :  { %1796 = vsyncadd [#allocation4], 4294967168 }
0x117f   :  { %1504 = vsyncpa [#allocation3], 1 }
0x1180   :  { %1505 = vsyncpa [#allocation6], 1 }
0x1181   :  { %1506 = vsyncpa [#allocation9], 1 }
0x1182   :  { %1507 = vsyncpa [#allocation4], 1 }

</bundles_post_ra>
